<compile_context>
chip_gen: v7x
topology: tpu7x:2x2x1
jax: 0.10.0
libtpu: 0.0.40
codegen_flags: <defaults>
</compile_context>

<pallas_src>
import functools

import jax
import jax.numpy as jnp
from jax.experimental import pallas as pl
from jax.experimental.pallas import tpu as pltpu

# ---- static module hyper-parameters --------------------------------------
DIM = 32
NUM_HEADS = 4
HEAD_DIM = DIM // NUM_HEADS
SCALE = HEAD_DIM ** (-0.5)        # qk_scale=None -> head_dim**-0.5


# ---- fused attention kernel (one batch tile per grid step) ----------------
def _attention_kernel(x_ref, wqkv_ref, wproj_ref, bproj_ref, out_ref, *, bt, n_tok):
    # ---- input tile (bt, N, 32) -> token-major (bt*N, 32) ----
    x2 = x_ref[...].reshape(bt * n_tok, DIM)

    # ---- fused q/k/v projection (attention scale pre-folded into q cols) ----
    qkv = jnp.dot(x2, wqkv_ref[...],
                  preferred_element_type=jnp.float32)        # (bt*N, 96)
    qkv3 = qkv.reshape(bt, n_tok, 3 * DIM)

    # ---- stack heads along the LEADING axis: group g = h*bt + b ----
    def heads(base):
        return jnp.concatenate(
            [qkv3[:, :, base + h * HEAD_DIM: base + (h + 1) * HEAD_DIM]
             for h in range(NUM_HEADS)],
            axis=0)                                          # (H*bt, N, HEAD_DIM)

    qh = heads(0)
    kh = heads(DIM)
    vh = heads(2 * DIM)

    # ---- scores + exp (softmax numerator); bf16 MXU inputs, f32 accumulate ----
    s = jnp.einsum('gqd,gkd->gqk',
                   qh.astype(jnp.bfloat16), kh.astype(jnp.bfloat16),
                   preferred_element_type=jnp.float32)       # (H*bt, N, N)
    s = s - jnp.max(s, axis=-1, keepdims=True)
    p = jnp.exp(s).astype(jnp.bfloat16)                      # unnormalized probs

    # ---- PV matmul with a fused ones column: o_unnorm (cols 0:8) and the
    #      softmax row-sum l (col 8) come out of a single MXU op ----
    ones_col = jnp.ones((NUM_HEADS * bt, n_tok, 1), jnp.bfloat16)
    vh_aug = jnp.concatenate([vh.astype(jnp.bfloat16), ones_col], axis=-1)
    o_aug = jnp.einsum('gqk,gkd->gqd', p, vh_aug,
                       preferred_element_type=jnp.float32)   # (H*bt, N, 9)
    o = o_aug[:, :, :HEAD_DIM] * pl.reciprocal(o_aug[:, :, HEAD_DIM:], approx=True)

    # ---- concat heads back to (bt, N, 32); single output projection ----
    o_cat = jnp.concatenate([o[h * bt:(h + 1) * bt] for h in range(NUM_HEADS)],
                            axis=-1)                         # (bt, N, 32)
    out2 = jnp.dot(o_cat.reshape(bt * n_tok, DIM), wproj_ref[...],
                   preferred_element_type=jnp.float32)
    out2 = out2 + bproj_ref[...]                             # (bt*N, 32) + (1, 32)
    out_ref[...] = out2.reshape(bt, n_tok, DIM).astype(out_ref.dtype)


# ---- chip-aware tile / VMEM configuration ----------------------------------
def _tpu_config():
    """Returns (max_bt, vmem_limit_bytes, prefer_two_steps)."""
    vmem_cap = None
    try:
        vmem_cap = int(pltpu.get_tpu_info().vmem_capacity_bytes)
    except Exception:
        pass
    kind = ""
    try:
        kind = jax.devices()[0].device_kind.lower()
    except Exception:
        pass
    is_v7 = ("v7" in kind) or (vmem_cap is not None and vmem_cap <= (64 << 20))
    if is_v7:
        # 64 MiB physical VMEM, 2 TensorCores: modest tile, keep >= 2 grid steps.
        return 16, 32 << 20, True
    if "v5" in kind:
        # v5e: single TC, raise the 16 MiB scoped default, keep tile small.
        return 8, 64 << 20, False
    # v6e-class (128 MiB VMEM, single TC): big tile amortizes per-step overhead.
    return 32, 64 << 20, False


def _pick_bt(batch, max_bt, prefer_two_steps):
    divisors = [d for d in range(1, min(batch, max_bt) + 1) if batch % d == 0]
    if prefer_two_steps:
        cands = [d for d in divisors if batch // d >= 2] or divisors
    else:
        cands = divisors
    return max(cands)


# ---- wrapper ---------------------------------------------------------------
def attention_forward(x, params):
    """x: (B, N, C) with C == DIM.  params = [wq, wkv, wproj, bproj], (in, out) layout."""
    wq, wkv, wproj, bproj = params
    B, N, C = x.shape
    assert C == DIM and N % 8 == 0

    # host-side weight prep: fold attention scale into wq, fuse [q|k|v] weights.
    wqkv = jnp.concatenate([wq * jnp.asarray(SCALE, wq.dtype), wkv], axis=1)  # (32, 96)
    bproj2 = bproj.reshape(1, DIM)

    max_bt, vmem_limit, prefer_two_steps = _tpu_config()
    bt = _pick_bt(B, max_bt, prefer_two_steps)

    kernel = functools.partial(_attention_kernel, bt=bt, n_tok=N)

    def wspec(p):
        return pl.BlockSpec(p.shape, lambda b, _nd=p.ndim: (0,) * _nd)

    out = pl.pallas_call(
        kernel,
        out_shape=jax.ShapeDtypeStruct((B, N, C), x.dtype),
        grid=(B // bt,),
        in_specs=[pl.BlockSpec((bt, N, C), lambda b: (b, 0, 0))]
                 + [wspec(p) for p in (wqkv, wproj, bproj2)],
        out_specs=pl.BlockSpec((bt, N, C), lambda b: (b, 0, 0)),
        compiler_params=pltpu.CompilerParams(
            dimension_semantics=("parallel",),
            vmem_limit_bytes=vmem_limit),
    )(x, wqkv, wproj, bproj2)
    return out


# ---- pure-JAX reference (exact port of the PyTorch forward) ----------------
def attention_ref(x, params):
    wq, wkv, wproj, bproj = params
    B, N, C = x.shape
    q = x @ wq
    kv = x @ wkv
    k, v = kv[..., :C], kv[..., C:]

    def split_heads(t):
        return t.reshape(B, N, NUM_HEADS, HEAD_DIM).transpose(0, 2, 1, 3)

    qh, kh, vh = split_heads(q), split_heads(k), split_heads(v)
    s = jnp.einsum('bhqd,bhkd->bhqk', qh, kh) * SCALE
    p = jax.nn.softmax(s, axis=-1)
    o = jnp.einsum('bhqk,bhkd->bhqd', p, vh)
    o = o.transpose(0, 2, 1, 3).reshape(B, N, C)
    return o @ wproj + bproj


# ---- deterministic demo -----------------------------------------------------
if __name__ == "__main__":
    B, H_sp, W_sp = 2, 8, 8
    N = H_sp * W_sp                                   # 64 tokens
    key = jax.random.PRNGKey(0)
    kx, kq, kkv, kp, kb = jax.random.split(key, 5)
    x = jax.random.normal(kx, (B, N, DIM), jnp.float32)
    wq = 0.05 * jax.random.normal(kq, (DIM, DIM), jnp.float32)        # q (no bias)
    wkv = 0.05 * jax.random.normal(kkv, (DIM, 2 * DIM), jnp.float32)  # kv (no bias)
    wproj = 0.05 * jax.random.normal(kp, (DIM, DIM), jnp.float32)
    bproj = 0.05 * jax.random.normal(kb, (DIM,), jnp.float32)
    params = [wq, wkv, wproj, bproj]

    out = attention_forward(x, params)
    jax.block_until_ready(out)
    assert out.shape == (B, N, DIM)

    ref = attention_ref(x, params)
    err = float(jnp.max(jnp.abs(out - ref)))
    assert jnp.allclose(out, ref, rtol=5e-2, atol=5e-3), f"max abs err {err}"
    print("KERNEL_OK")
</pallas_src>

<mosaic_0001>
module attributes {stable_mosaic.version = 11 : i64} {
  func.func @_attention_kernel(%arg0: i32, %arg1: memref<2x64x32xf32, #tpu.memory_space<vmem>>, %arg2: memref<32x96xf32, #tpu.memory_space<vmem>>, %arg3: memref<32x32xf32, #tpu.memory_space<vmem>>, %arg4: memref<1x32xf32, #tpu.memory_space<vmem>>, %arg5: memref<2x64x32xf32, #tpu.memory_space<vmem>>) attributes {dimension_semantics = [#tpu.dimension_semantics<parallel>], iteration_bounds = array<i64: 1>, scalar_prefetch = 0 : i64, scratch_operands = 0 : i64, tpu.core_type = #tpu.core_type<tc>, window_params = [{transform_indices = @transform_0, window_bounds = array<i64: 2, 64, 32>}, {pipeline_mode = #tpu.pipeline_mode<synchronous>, transform_indices = @transform_1, window_bounds = array<i64: 32, 96>}, {pipeline_mode = #tpu.pipeline_mode<synchronous>, transform_indices = @transform_2, window_bounds = array<i64: 32, 32>}, {pipeline_mode = #tpu.pipeline_mode<synchronous>, transform_indices = @transform_3, window_bounds = array<i64: 1, 32>}, {transform_indices = @transform_4, window_bounds = array<i64: 2, 64, 32>}]} {
    %c0 = arith.constant 0 : index
    %c0_0 = arith.constant 0 : index
    %c0_1 = arith.constant 0 : index
    %0 = vector.load %arg1[%c0, %c0_0, %c0_1] : memref<2x64x32xf32, #tpu.memory_space<vmem>>, vector<2x64x32xf32>
    %1 = vector.shape_cast %0 : vector<2x64x32xf32> to vector<128x32xf32>
    %c0_2 = arith.constant 0 : index
    %c0_3 = arith.constant 0 : index
    %2 = vector.load %arg2[%c0_2, %c0_3] : memref<32x96xf32, #tpu.memory_space<vmem>>, vector<32x96xf32>
    %cst = arith.constant dense<0.000000e+00> : vector<128x96xf32>
    %3 = tpu.matmul %1, %2, %cst {dimension_numbers = #tpu.dot_dimension_numbers<[1], [0], [0], [1], [0, 0, 1, 1], [], []>} : vector<128x32xf32>, vector<32x96xf32>, vector<128x96xf32> -> vector<128x96xf32>
    %4 = vector.shape_cast %3 : vector<128x96xf32> to vector<2x64x96xf32>
    %5 = vector.extract_strided_slice %4 {offsets = [0, 0, 0], sizes = [2, 64, 8], strides = [1, 1, 1]} : vector<2x64x96xf32> to vector<2x64x8xf32>
    %6 = vector.extract_strided_slice %4 {offsets = [0, 0, 8], sizes = [2, 64, 8], strides = [1, 1, 1]} : vector<2x64x96xf32> to vector<2x64x8xf32>
    %7 = vector.extract_strided_slice %4 {offsets = [0, 0, 16], sizes = [2, 64, 8], strides = [1, 1, 1]} : vector<2x64x96xf32> to vector<2x64x8xf32>
    %8 = vector.extract_strided_slice %4 {offsets = [0, 0, 24], sizes = [2, 64, 8], strides = [1, 1, 1]} : vector<2x64x96xf32> to vector<2x64x8xf32>
    %9 = tpu.concatenate %5, %6, %7, %8 in 0 : vector<2x64x8xf32>, vector<2x64x8xf32>, vector<2x64x8xf32>, vector<2x64x8xf32> -> vector<8x64x8xf32>
    %10 = vector.extract_strided_slice %4 {offsets = [0, 0, 32], sizes = [2, 64, 8], strides = [1, 1, 1]} : vector<2x64x96xf32> to vector<2x64x8xf32>
    %11 = vector.extract_strided_slice %4 {offsets = [0, 0, 40], sizes = [2, 64, 8], strides = [1, 1, 1]} : vector<2x64x96xf32> to vector<2x64x8xf32>
    %12 = vector.extract_strided_slice %4 {offsets = [0, 0, 48], sizes = [2, 64, 8], strides = [1, 1, 1]} : vector<2x64x96xf32> to vector<2x64x8xf32>
    %13 = vector.extract_strided_slice %4 {offsets = [0, 0, 56], sizes = [2, 64, 8], strides = [1, 1, 1]} : vector<2x64x96xf32> to vector<2x64x8xf32>
    %14 = tpu.concatenate %10, %11, %12, %13 in 0 : vector<2x64x8xf32>, vector<2x64x8xf32>, vector<2x64x8xf32>, vector<2x64x8xf32> -> vector<8x64x8xf32>
    %15 = vector.extract_strided_slice %4 {offsets = [0, 0, 64], sizes = [2, 64, 8], strides = [1, 1, 1]} : vector<2x64x96xf32> to vector<2x64x8xf32>
    %16 = vector.extract_strided_slice %4 {offsets = [0, 0, 72], sizes = [2, 64, 8], strides = [1, 1, 1]} : vector<2x64x96xf32> to vector<2x64x8xf32>
    %17 = vector.extract_strided_slice %4 {offsets = [0, 0, 80], sizes = [2, 64, 8], strides = [1, 1, 1]} : vector<2x64x96xf32> to vector<2x64x8xf32>
    %18 = vector.extract_strided_slice %4 {offsets = [0, 0, 88], sizes = [2, 64, 8], strides = [1, 1, 1]} : vector<2x64x96xf32> to vector<2x64x8xf32>
    %19 = tpu.concatenate %15, %16, %17, %18 in 0 : vector<2x64x8xf32>, vector<2x64x8xf32>, vector<2x64x8xf32>, vector<2x64x8xf32> -> vector<8x64x8xf32>
    %20 = arith.truncf %9 : vector<8x64x8xf32> to vector<8x64x8xbf16>
    %21 = arith.truncf %14 : vector<8x64x8xf32> to vector<8x64x8xbf16>
    "tpu.trace_start"() <{level = 10 : i32, message = "gqd,gkd->gqk"}> : () -> ()
    %cst_4 = arith.constant dense<0.000000e+00> : vector<8x64x64xf32>
    %22 = tpu.matmul %20, %21, %cst_4 {dimension_numbers = #tpu.dot_dimension_numbers<[2], [2], [1], [1], [0, 0, 0, 1, 1, 1], [0], [0]>} : vector<8x64x8xbf16>, vector<8x64x8xbf16>, vector<8x64x64xf32> -> vector<8x64x64xf32>
    "tpu.trace_stop"() : () -> ()
    %cst_5 = arith.constant dense<0xFF800000> : vector<8x64xf32>
    %23 = vector.multi_reduction <maximumf>, %22, %cst_5 [2] : vector<8x64x64xf32> to vector<8x64xf32>
    %24 = vector.shape_cast %23 : vector<8x64xf32> to vector<8x64x1xf32>
    %25 = vector.broadcast %24 : vector<8x64x1xf32> to vector<8x64x64xf32>
    %26 = arith.subf %22, %25 : vector<8x64x64xf32>
    %27 = math.exp %26 : vector<8x64x64xf32>
    %28 = arith.truncf %27 : vector<8x64x64xf32> to vector<8x64x64xbf16>
    %cst_6 = arith.constant 1.000000e+00 : bf16
    %29 = vector.broadcast %cst_6 : bf16 to vector<8x64x1xbf16>
    %30 = arith.truncf %19 : vector<8x64x8xf32> to vector<8x64x8xbf16>
    %31 = tpu.concatenate %30, %29 in 2 : vector<8x64x8xbf16>, vector<8x64x1xbf16> -> vector<8x64x9xbf16>
    "tpu.trace_start"() <{level = 10 : i32, message = "gqk,gkd->gqd"}> : () -> ()
    %cst_7 = arith.constant dense<0.000000e+00> : vector<8x64x9xf32>
    %32 = tpu.matmul %28, %31, %cst_7 {dimension_numbers = #tpu.dot_dimension_numbers<[2], [1], [1], [2], [0, 0, 0, 1, 1, 2], [0], [0]>} : vector<8x64x64xbf16>, vector<8x64x9xbf16>, vector<8x64x9xf32> -> vector<8x64x9xf32>
    "tpu.trace_stop"() : () -> ()
    %33 = vector.extract_strided_slice %32 {offsets = [0, 0, 0], sizes = [8, 64, 8], strides = [1, 1, 1]} : vector<8x64x9xf32> to vector<8x64x8xf32>
    %34 = vector.extract_strided_slice %32 {offsets = [0, 0, 8], sizes = [8, 64, 1], strides = [1, 1, 1]} : vector<8x64x9xf32> to vector<8x64x1xf32>
    %35 = tpu.reciprocal %34 {approx = true} : vector<8x64x1xf32> -> vector<8x64x1xf32>
    %36 = vector.broadcast %35 : vector<8x64x1xf32> to vector<8x64x8xf32>
    %37 = arith.mulf %33, %36 : vector<8x64x8xf32>
    %38 = vector.extract_strided_slice %37 {offsets = [0, 0, 0], sizes = [2, 64, 8], strides = [1, 1, 1]} : vector<8x64x8xf32> to vector<2x64x8xf32>
    %39 = vector.extract_strided_slice %37 {offsets = [2, 0, 0], sizes = [2, 64, 8], strides = [1, 1, 1]} : vector<8x64x8xf32> to vector<2x64x8xf32>
    %40 = vector.extract_strided_slice %37 {offsets = [4, 0, 0], sizes = [2, 64, 8], strides = [1, 1, 1]} : vector<8x64x8xf32> to vector<2x64x8xf32>
    %41 = vector.extract_strided_slice %37 {offsets = [6, 0, 0], sizes = [2, 64, 8], strides = [1, 1, 1]} : vector<8x64x8xf32> to vector<2x64x8xf32>
    %42 = tpu.concatenate %38, %39, %40, %41 in 2 : vector<2x64x8xf32>, vector<2x64x8xf32>, vector<2x64x8xf32>, vector<2x64x8xf32> -> vector<2x64x32xf32>
    %43 = vector.shape_cast %42 : vector<2x64x32xf32> to vector<128x32xf32>
    %c0_8 = arith.constant 0 : index
    %c0_9 = arith.constant 0 : index
    %44 = vector.load %arg3[%c0_8, %c0_9] : memref<32x32xf32, #tpu.memory_space<vmem>>, vector<32x32xf32>
    %cst_10 = arith.constant dense<0.000000e+00> : vector<128x32xf32>
    %45 = tpu.matmul %43, %44, %cst_10 {dimension_numbers = #tpu.dot_dimension_numbers<[1], [0], [0], [1], [0, 0, 1, 1], [], []>} : vector<128x32xf32>, vector<32x32xf32>, vector<128x32xf32> -> vector<128x32xf32>
    %c0_11 = arith.constant 0 : index
    %c0_12 = arith.constant 0 : index
    %46 = vector.load %arg4[%c0_11, %c0_12] : memref<1x32xf32, #tpu.memory_space<vmem>>, vector<1x32xf32>
    %47 = vector.broadcast %46 : vector<1x32xf32> to vector<128x32xf32>
    %48 = arith.addf %45, %47 : vector<128x32xf32>
    %49 = vector.shape_cast %48 : vector<128x32xf32> to vector<2x64x32xf32>
    %c0_13 = arith.constant 0 : index
    %c0_14 = arith.constant 0 : index
    %c0_15 = arith.constant 0 : index
    %50 = vector.load %arg5[%c0_13, %c0_14, %c0_15] : memref<2x64x32xf32, #tpu.memory_space<vmem>>, vector<2x64x32xf32>
    tpu.vector_store %arg5[%c0_13, %c0_14, %c0_15], %49 {strides = array<i32>} : memref<2x64x32xf32, #tpu.memory_space<vmem>>, vector<2x64x32xf32>,
    return
  }
  func.func @transform_0(%arg0: i32) -> (i32, i32, i32) {
    %c0_i32 = arith.constant 0 : i32
    %c0_i32_0 = arith.constant 0 : i32
    %c0_i32_1 = arith.constant 0 : i32
    return %arg0, %c0_i32, %c0_i32_0 : i32, i32, i32
  }
  func.func @transform_1(%arg0: i32) -> (i32, i32) {
    %c0_i32 = arith.constant 0 : i32
    %c0_i32_0 = arith.constant 0 : i32
    %c0_i32_1 = arith.constant 0 : i32
    return %c0_i32, %c0_i32_0 : i32, i32
  }
  func.func @transform_2(%arg0: i32) -> (i32, i32) {
    %c0_i32 = arith.constant 0 : i32
    %c0_i32_0 = arith.constant 0 : i32
    %c0_i32_1 = arith.constant 0 : i32
    return %c0_i32, %c0_i32_0 : i32, i32
  }
  func.func @transform_3(%arg0: i32) -> (i32, i32) {
    %c0_i32 = arith.constant 0 : i32
    %c0_i32_0 = arith.constant 0 : i32
    %c0_i32_1 = arith.constant 0 : i32
    return %c0_i32, %c0_i32_0 : i32, i32
  }
  func.func @transform_4(%arg0: i32) -> (i32, i32, i32) {
    %c0_i32 = arith.constant 0 : i32
    %c0_i32_0 = arith.constant 0 : i32
    %c0_i32_1 = arith.constant 0 : i32
    return %arg0, %c0_i32, %c0_i32_0 : i32, i32, i32
  }
}

</mosaic_0001>

<bundles_post_ra>
// kernel: tpu_custom_call.1
= control target key start
LH: loop header
LB: loop body
LE: loop exit
PB: predicated region body
PF: predicated region fallthrough
CT: control target
= control target key end

     0   :  { %9 = vsyncpa [#allocation3], 0  ;;  %s6017_s0 = inlined_call_operand.hbm [shape: f32[2,64,32], index: 0, kind: input, shape index: {}]   ;;  %s6018_s1 = inlined_call_operand.hbm [shape: f32[32,96], index: 1, kind: input, shape index: {}]   ;;  %s6019_s2 = inlined_call_operand.hbm [shape: f32[32,32], index: 2, kind: input, shape index: {}]   ;;  %s6020_s3 = inlined_call_operand.hbm [shape: f32[1,32], index: 3, kind: input, shape index: {}]   ;;  %s6021_s4 = inlined_call_operand.hbm [shape: f32[2,64,32], index: 4, kind: output, shape index: {}]  }
   0x1   :  { %10 = vsyncpa [#allocation6], 0 }
   0x2   :  { %11 = vsyncpa [#allocation9], 0 }
   0x3   :  { %12 = vsyncpa [#allocation4], 0  ;;  %s4559_s15 = smov [#allocation5]   ;;  %s4560_s17 = smov [#allocation2]  }
   0x4   :  { %s30_s16 = sshll.u32 %s4559_s15, 4  ;;  %s18_s18 = sshll.u32 %s4560_s17, 4  ;;  %s31_s16 = int_to_ptr.vmem [resolvable:$true] %s30_s16  ;;  %s4599_s18 = int_to_ptr.vmem [resolvable:$true] %s18_s18 }
   0x5   :  { %s4441_s21 = scalar_lea.hbm %s6018_s1, 512 }
   0x6   :  { %p4442_p0 = scmp.ne.s32.totalorder %s6018_s1, %s4441_s21  ;;  %p4445_p1 = scmp.lt.u32.totalorder %s4441_s21, %s6018_s1 }
   0x8   :  { %p4447_p2 = pnand %p4445_p1, %p4442_p0 }
   0xa   :  { %4450 = shalt.err (!%p4447_p2)
}
   0xb   :  { %s4451_s26 = scalar_lea.vmem %s31_s16, 512  ;;  %p4456_p4 = scmp.lt.s32.totalorder %s31_s16, %s31_s16 }
   0xc   :  { %p4452_p3 = scmp.ne.s32.totalorder %s31_s16, %s4451_s26  ;;  %p4457_p5 = scmp.lt.s32.totalorder %s4451_s26, %s4451_s26 }
   0xe   :  { %p4458_p6 = por %p4457_p5, %p4456_p4 }
  0x10   :  { %p4459_p7 = pnand %p4458_p6, %p4452_p3 }
  0x12   :  { %4462 = shalt.err (!%p4459_p7)
}
  0x13   :  { %s4561_s27 = smov 128   ;;  %s4562_s28 = smov 8  }
  0x14   :  { %36 = dma.hbm_to_vmem [thread:$0]  %s6018_s1, 512, %s31_s16, [#allocation6], %s4561_s27, %s4561_s27, %s4562_s28  }
  0x15   :  { %s4463_s7 = scalar_lea.hbm %s6017_s0, 2048 }
  0x16   :  { %p4464_p8 = scmp.ne.s32.totalorder %s6017_s0, %s4463_s7  ;;  %p4467_p9 = scmp.lt.u32.totalorder %s4463_s7, %s6017_s0 }
  0x18   :  { %p4469_p10 = pnand %p4467_p9, %p4464_p8 }
  0x1a   :  { %4472 = shalt.err (!%p4469_p10)
}
  0x1b   :  { %s4473_s12 = scalar_lea.vmem %s4599_s18, 2048  ;;  %p4478_p12 = scmp.lt.s32.totalorder %s4599_s18, %s4599_s18 }
  0x1c   :  { %p4474_p11 = scmp.ne.s32.totalorder %s4599_s18, %s4473_s12  ;;  %p4479_p13 = scmp.lt.s32.totalorder %s4473_s12, %s4473_s12 }
  0x1e   :  { %p4480_p0 = por %p4479_p13, %p4478_p12 }
  0x20   :  { %p4481_p1 = pnand %p4480_p0, %p4474_p11 }
  0x22   :  { %4484 = shalt.err (!%p4481_p1)
}
  0x23   :  { %24 = dma.hbm_to_vmem [thread:$0]  %s6017_s0, 2048, %s4599_s18, [#allocation3], %s4561_s27, %s4561_s27, %s4562_s28  }
  0x24   :  { %s4563_s14 = smov [#allocation7]   ;;  %s4564_s16 = smov [#allocation8]  }
  0x25   :  { %s42_s15 = sshll.u32 %s4563_s14, 4  ;;  %s55_s17 = sshll.u32 %s4564_s16, 4  ;;  %s43_s15 = int_to_ptr.vmem [resolvable:$true] %s42_s15  ;;  %s56_s17 = int_to_ptr.vmem [resolvable:$true] %s55_s17 }
  0x26   :  { %s4485_s21 = scalar_lea.hbm %s6019_s2, 512 }
  0x27   :  { %p4486_p2 = scmp.ne.s32.totalorder %s6019_s2, %s4485_s21  ;;  %p4489_p3 = scmp.lt.u32.totalorder %s4485_s21, %s6019_s2 }
  0x29   :  { %p4491_p4 = pnand %p4489_p3, %p4486_p2 }
  0x2b   :  { %4494 = shalt.err (!%p4491_p4)
}
  0x2c   :  { %s4495_s0 = scalar_lea.vmem %s43_s15, 512  ;;  %p4500_p6 = scmp.lt.s32.totalorder %s43_s15, %s43_s15 }
  0x2d   :  { %p4496_p5 = scmp.ne.s32.totalorder %s43_s15, %s4495_s0  ;;  %p4501_p7 = scmp.lt.s32.totalorder %s4495_s0, %s4495_s0 }
  0x2f   :  { %p4502_p8 = por %p4501_p7, %p4500_p6 }
  0x31   :  { %p4503_p9 = pnand %p4502_p8, %p4496_p5 }
  0x33   :  { %4506 = shalt.err (!%p4503_p9)
}
  0x34   :  { %48 = dma.hbm_to_vmem [thread:$0]  %s6019_s2, 512, %s43_s15, [#allocation6], %s4561_s27, %s4561_s27, %s4562_s28  }
  0x35   :  { %s4507_s5 = scalar_lea.hbm %s6020_s3, 16 }
  0x36   :  { %p4508_p10 = scmp.ne.s32.totalorder %s6020_s3, %s4507_s5  ;;  %p4511_p11 = scmp.lt.u32.totalorder %s4507_s5, %s6020_s3 }
  0x38   :  { %p4513_p12 = pnand %p4511_p11, %p4508_p10 }
  0x3a   :  { %4516 = shalt.err (!%p4513_p12)
}
  0x3b   :  { %s4517_s10 = scalar_lea.vmem %s56_s17, 16  ;;  %s4521_s11 = scalar_lea.vmem %s56_s17, 32 }
  0x3c   :  { %p4518_p13 = scmp.ne.s32.totalorder %s56_s17, %s4517_s10  ;;  %p4522_p0 = scmp.lt.s32.totalorder %s56_s17, %s56_s17 }
  0x3d   :  { %p4523_p1 = scmp.lt.s32.totalorder %s4521_s11, %s4517_s10 }
  0x3f   :  { %p4524_p2 = por %p4523_p1, %p4522_p0 }
  0x41   :  { %p4525_p3 = pnand %p4524_p2, %p4518_p13 }
  0x43   :  { %4528 = shalt.err (!%p4525_p3)
}
  0x44   :  { %58 = dma.hbm_to_vmem [thread:$0]  %s6020_s3, 16, %s56_s17, [#allocation9]  }
  0x45   :  { %4551 = dma.done.wait [#allocation3], 2048  }
  0x46   :  { %4552 = vsyncadd [#allocation3], 4294965248 }
  0x47   :  { %4553 = dma.done.wait [#allocation6], 1024  }
  0x48   :  { %4554 = vsyncadd [#allocation6], 4294966272 }
  0x49   :  { %4555 = dma.done.wait [#allocation9], 16  }
  0x4a   :  { %4556 = vsyncadd [#allocation9], 4294967280  ;;  %vm93_vm0 = vcmask 261120   ;;  %v89_v0 = vld [vmem:[#allocation5] sm:$0xff]  ;;  %v90_v1 = vld [vmem:[#allocation5 + $0x8] sm:$0xff]  ;;  %vm491_vm1 = vcmask 64512  }
  0x4b   :  { %v91_v2 = vld [vmem:[#allocation5 + $0x10] sm:$0xff]  ;;  %v3996_v3 = vpack.c.bf16 %v90_v1, %v89_v0  ;;  %v92_v4 = vld [vmem:[#allocation5 + $0x18] sm:$0xff]  ;;  %v73_v5 = vld [vmem:[#allocation2] sm:$0xff]  ;;  %s4565_s3 = smov 120   ;;  %s4566_s1 = smov 96   ;;  %vm1288_vm2 = vcmask 523264  }
  0x4c   :  { %v4000_v6 = vpack.c.bf16 %v92_v4, %v91_v2  ;;  %3684 = vmatprep.mubr.msk.f32.mxu0 %vm93_vm0, %v73_v5  ;;  %v74_v7 = vld [vmem:[#allocation2 + $0x8] sm:$0xff]  ;;  %v75_v8 = vld [vmem:[#allocation2 + $0x10] sm:$0xff]  ;;  %v76_v9 = vld [vmem:[#allocation2 + $0x18] sm:$0xff]  ;;  %s4567_s13 = smov 112   ;;  %s4568_s14 = smov 104   ;;  %vm3138_vm3 = vcmask 130048  }
  0x4d   :  { %3997 = vmatprep.subr.bf16.mxu0 %v3996_v3  ;;  %v77_v10 = vld [vmem:[#allocation2 + $0x20] sm:$0xff]  ;;  %v78_v11 = vld [vmem:[#allocation2 + $0x28] sm:$0xff]  ;;  %v79_v12 = vld [vmem:[#allocation2 + $0x30] sm:$0xff]  ;;  %s4569_s15 = smov 64   ;;  %s4571_s16 = smov 16   ;;  %vm3155_vm4 = vcmask 195584  }
  0x4e   :  { %3999 = vmatpush3.bf16.msra.mxu0 %v3996_v3  ;;  %v80_v13 = vld [vmem:[#allocation2 + $0x38] sm:$0xff]  ;;  %v81_v14 = vld [vmem:[#allocation2 + $0x40] sm:$0xff]  ;;  %v82_v15 = vld [vmem:[#allocation2 + $0x48] sm:$0xff]  ;;  %s4572_s17 = smov 24   ;;  %s4573_s19 = smov [#allocation10]  }
  0x4f   :  { %4001 = vmatprep.subr.bf16.mxu0 %v4000_v6  ;;  %v83_v16 = vld [vmem:[#allocation2 + $0x50] sm:$0xff]  ;;  %v84_v17 = vld [vmem:[#allocation2 + $0x58] sm:$0xff]  ;;  %v85_v18 = vld [vmem:[#allocation2 + $0x60] sm:$0xff]  ;;  %s3397_s20 = sshll.u32 %s4573_s19, 4  ;;  %s3398_s20 = int_to_ptr.vmem [resolvable:$true] %s3397_s20 }
  0x50   :  { %v86_v19 = vld [vmem:[#allocation2 + $0x68] sm:$0xff]  ;;  %v87_v20 = vld [vmem:[#allocation2 + $0x70] sm:$0xff]  ;;  %v88_v21 = vld [vmem:[#allocation2 + $0x78] sm:$0xff]  ;;  %s4529_s21 = scalar_lea.vmem %s3398_s20, 2048  ;;  %p4534_p5 = scmp.lt.s32.totalorder %s3398_s20, %s3398_s20 }
  0x51   :  { %p4530_p4 = scmp.ne.s32.totalorder %s3398_s20, %s4529_s21  ;;  %p4535_p6 = scmp.lt.s32.totalorder %s4529_s21, %s4529_s21 }
  0x52   :  { %4003 = vmatpush3.bf16.msra.mxu0 %v4000_v6 }
  0x53   :  { %p4536_p7 = por %p4535_p6, %p4534_p5 }
  0x55   :  { %3685 = vmatmul.mubr.msk.f32.vlgmr.msra.gmra.mrb[0].mxu0 %vm93_vm0, %v74_v7  ;;  %p4537_p8 = pnand %p4536_p7, %p4530_p4 }
  0x56   :  { %3687 = vmatprep.mubr.msk.f32.mxu0 %vm93_vm0, %v75_v8 }
  0x59   :  { %3688 = vmatmul.mubr.msk.f32.gmra.mrb[2].mxu0 %vm93_vm0, %v76_v9 }
  0x5a   :  { %3690 = vmatprep.mubr.msk.f32.mxu0 %vm93_vm0, %v77_v10 }
  0x5d   :  { %3691 = vmatmul.mubr.msk.f32.gmra.mrb[4].mxu0 %vm93_vm0, %v78_v11 }
  0x5e   :  { %3693 = vmatprep.mubr.msk.f32.mxu0 %vm93_vm0, %v79_v12 }
  0x61   :  { %3694 = vmatmul.mubr.msk.f32.gmra.mrb[6].mxu0 %vm93_vm0, %v80_v13 }
  0x62   :  { %3696 = vmatprep.mubr.msk.f32.mxu0 %vm93_vm0, %v81_v14 }
  0x65   :  { %3697 = vmatmul.mubr.msk.f32.gmra.mrb[8].mxu0 %vm93_vm0, %v82_v15 }
  0x66   :  { %3699 = vmatprep.mubr.msk.f32.mxu0 %vm93_vm0, %v83_v16 }
  0x69   :  { %3700 = vmatmul.mubr.msk.f32.gmra.mrb[10].mxu0 %vm93_vm0, %v84_v17 }
  0x6a   :  { %3702 = vmatprep.mubr.msk.f32.mxu0 %vm93_vm0, %v85_v18 }
  0x6d   :  { %3703 = vmatmul.mubr.msk.f32.gmra.mrb[12].mxu0 %vm93_vm0, %v86_v19 }
  0x6e   :  { %3705 = vmatprep.mubr.msk.f32.mxu0 %vm93_vm0, %v87_v20 }
  0x71   :  { %3706 = vmatmul.mubr.msk.f32.gmra.mrb[14].mxu0 %vm93_vm0, %v88_v21 }
 0x128   :  { %v3686_v22 = vpop.f32.mrb[0].mxu0 }
 0x129   :  { %v208_v23 = vpop.f32.mrb[1].mxu0 }
 0x12a   :  { %v4679_v24 = vpack.i.bf16 %v3686_v22, %v208_v23  ;;  %v4681_v25 = vpack.c.bf16 %v3686_v22, %v208_v23 }
 0x12c   :  { %4064 = vrot.lane.b32.xlu0 %v4679_v24, %s4565_s3  ;;  %v3689_v26 = vpop.f32.mrb[2].mxu0  ;;  %3716 = vmatprep.mubr.msk.bf16.mxu1 %vm491_vm1, %v4681_v25 }
 0x12d   :  { %v218_v27 = vpop.f32.mrb[3].mxu0 }
 0x12e   :  { %v4687_v28 = vpack.i.bf16 %v3689_v26, %v218_v27  ;;  %v4689_v29 = vpack.c.bf16 %v3689_v26, %v218_v27 }
 0x130   :  { %4069 = vrot.lane.b32.xlu0 %v4687_v28, %s4565_s3  ;;  %v3692_v30 = vpop.f32.mrb[4].mxu0 }
 0x131   :  { %v228_v31 = vpop.f32.mrb[5].mxu0 }
 0x132   :  { %v4693_v32 = vpack.i.bf16 %v3692_v30, %v228_v31  ;;  %v4695_v33 = vpack.c.bf16 %v3692_v30, %v228_v31 }
 0x134   :  { %v3695_v34 = vpop.f32.mrb[6].mxu0 }
 0x135   :  { %v238_v35 = vpop.f32.mrb[7].mxu0 }
 0x136   :  { %v4697_v36 = vpack.i.bf16 %v3695_v34, %v238_v35  ;;  %v4699_v37 = vpack.c.bf16 %v3695_v34, %v238_v35 }
 0x138   :  { %v3698_v38 = vpop.f32.mrb[8].mxu0 }
 0x139   :  { %v248_v39 = vpop.f32.mrb[9].mxu0 }
 0x13a   :  { %v4701_v40 = vpack.c.bf16 %v3698_v38, %v248_v39  ;;  %v4703_v41 = vpack.i.bf16 %v3698_v38, %v248_v39 }
 0x13c   :  { %4074 = vrot.lane.b32.xlu1 %v4703_v41, %s4565_s3  ;;  %v3701_v42 = vpop.f32.mrb[10].mxu0  ;;  %3732 = vmatprep.mubr.msk.bf16.mxu0 %vm491_vm1, %v4701_v40 }
 0x13d   :  { %v258_v43 = vpop.f32.mrb[11].mxu0 }
 0x13e   :  { %v4709_v44 = vpack.i.bf16 %v3701_v42, %v258_v43  ;;  %v4711_v45 = vpack.c.bf16 %v3701_v42, %v258_v43 }
 0x140   :  { %4079 = vrot.lane.b32.xlu1 %v4693_v32, %s4565_s3  ;;  %4084 = vrot.lane.b32.xlu0 %v4709_v44, %s4565_s3  ;;  %v3704_v46 = vpop.f32.mrb[12].mxu0 }
 0x141   :  { %v268_v47 = vpop.f32.mrb[13].mxu0 }
 0x142   :  { %v4717_v48 = vpack.i.bf16 %v3704_v46, %v268_v47  ;;  %v4719_v49 = vpack.c.bf16 %v3704_v46, %v268_v47 }
 0x144   :  { %4089 = vrot.lane.b32.xlu1 %v4697_v36, %s4565_s3  ;;  %4094 = vrot.lane.b32.xlu0 %v4717_v48, %s4565_s3  ;;  %v3707_v50 = vpop.f32.mrb[14].mxu0 }
 0x145   :  { %v278_v51 = vpop.f32.mrb[15].mxu0 }
 0x146   :  { %v4725_v52 = vpack.i.bf16 %v3707_v50, %v278_v51  ;;  %v4727_v53 = vpack.c.bf16 %v3707_v50, %v278_v51 }
 0x148   :  { %483 = vrot.lane.b32.xlu1 %v4681_v25, %s4566_s1  ;;  %4099 = vrot.lane.b32.xlu0 %v4679_v24, %s4567_s13 }
 0x14c   :  { %485 = vrot.lane.b32.xlu0 %v4689_v29, %s4566_s1  ;;  %4104 = vrot.lane.b32.xlu1 %v4725_v52, %s4565_s3 }
 0x150   :  { %4109 = vrot.lane.b32.xlu0 %v4687_v28, %s4567_s13  ;;  %585 = vrot.lane.b32.xlu1 %v4701_v40, %s4566_s1 }
 0x154   :  { %487 = vrot.lane.b32.xlu0 %v4695_v33, %s4566_s1  ;;  %4114 = vrot.lane.b32.xlu1 %v4703_v41, %s4567_s13 }
 0x158   :  { %4119 = vrot.lane.b32.xlu0 %v4693_v32, %s4567_s13  ;;  %587 = vrot.lane.b32.xlu1 %v4711_v45, %s4566_s1 }
 0x15c   :  { %489 = vrot.lane.b32.xlu0 %v4699_v37, %s4566_s1  ;;  %4124 = vrot.lane.b32.xlu1 %v4709_v44, %s4567_s13 }
 0x160   :  { %4129 = vrot.lane.b32.xlu0 %v4697_v36, %s4567_s13  ;;  %589 = vrot.lane.b32.xlu1 %v4719_v49, %s4566_s1 }
 0x164   :  { %4134 = vrot.lane.b32.xlu1 %v4717_v48, %s4567_s13 }
 0x168   :  { %591 = vrot.lane.b32.xlu1 %v4727_v53, %s4566_s1 }
 0x16c   :  { %4144 = vrot.lane.b32.xlu1 %v4725_v52, %s4567_s13 }
 0x19e   :  { %v4065_v54 = vpop.permute.xlu0 %4064 }
 0x19f   :  { %v4067_v55 = vunpack.i.h.bf16 %v4065_v54  ;;  %v4066_v56 = vunpack.i.l.bf16 %v4065_v54 }
 0x1a1   :  { %v4755_v57 = vpack.c.bf16 %v4067_v55, %v4066_v56 }
 0x1a2   :  { %v4070_v58 = vpop.permute.xlu0 %4069 }
 0x1a3   :  { %686 = vrot.lane.b32.xlu0 %v4755_v57, %s4566_s1  ;;  %v4072_v59 = vunpack.i.h.bf16 %v4070_v58  ;;  %v4071_v60 = vunpack.i.l.bf16 %v4070_v58 }
 0x1a5   :  { %v4761_v61 = vpack.c.bf16 %v4072_v59, %v4071_v60 }
 0x1a7   :  { %4139 = vrot.lane.b32.xlu0 %v4679_v24, %s4568_s14 }
 0x1ab   :  { %688 = vrot.lane.b32.xlu0 %v4761_v61, %s4566_s1 }
 0x1ae   :  { %v4075_v62 = vpop.permute.xlu1 %4074 }
 0x1af   :  { %v4077_v63 = vunpack.i.h.bf16 %v4075_v62  ;;  %v4076_v0 = vunpack.i.l.bf16 %v4075_v62  ;;  %4149 = vrot.lane.b32.xlu0 %v4687_v28, %s4568_s14 }
 0x1b1   :  { %v4767_v1 = vpack.c.bf16 %v4077_v63, %v4076_v0 }
 0x1b2   :  { %v4080_v2 = vpop.permute.xlu1 %4079  ;;  %v4085_v3 = vpop.permute.xlu0 %4084 }
 0x1b3   :  { %v4082_v4 = vunpack.i.h.bf16 %v4080_v2  ;;  %v4081_v5 = vunpack.i.l.bf16 %v4080_v2  ;;  %787 = vrot.lane.b32.xlu1 %v4767_v1, %s4566_s1  ;;  %v4087_v6 = vunpack.i.h.bf16 %v4085_v3  ;;  %v4086_v7 = vunpack.i.l.bf16 %v4085_v3 }
 0x1b5   :  { %v4771_v8 = vpack.c.bf16 %v4082_v4, %v4081_v5  ;;  %v4777_v11 = vpack.c.bf16 %v4087_v6, %v4086_v7 }
 0x1b6   :  { %v4090_v9 = vpop.permute.xlu1 %4089  ;;  %v4095_v10 = vpop.permute.xlu0 %4094 }
 0x1b7   :  { %690 = vrot.lane.b32.xlu0 %v4771_v8, %s4566_s1  ;;  %4154 = vrot.lane.b32.xlu1 %v4703_v41, %s4568_s14  ;;  %v4092_v12 = vunpack.i.h.bf16 %v4090_v9  ;;  %v4091_v13 = vunpack.i.l.bf16 %v4090_v9  ;;  %v4097_v17 = vunpack.i.h.bf16 %v4095_v10  ;;  %v4096_v18 = vunpack.i.l.bf16 %v4095_v10 }
 0x1b9   :  { %v4785_v19 = vpack.c.bf16 %v4092_v12, %v4091_v13  ;;  %v4792_v22 = vpack.c.bf16 %v4097_v17, %v4096_v18 }
 0x1ba   :  { %v484_v14 = vpop.permute.xlu1 %483  ;;  %v4100_v15 = vpop.permute.xlu0 %4099 }
 0x1bb   :  { %4016 = vmatprep.subr.msk.bf16.mxu1 %vm491_vm1, %v484_v14  ;;  %4159 = vrot.lane.b32.xlu0 %v4693_v32, %s4568_s14  ;;  %v505_v16 = vsel %vm491_vm1, %v484_v14, 0  ;;  %v4102_v23 = vunpack.i.h.bf16 %v4100_v15  ;;  %v4101_v24 = vunpack.i.l.bf16 %v4100_v15 }
 0x1bc   :  { %789 = vrot.lane.b32.xlu1 %v4777_v11, %s4566_s1  ;;  %3709 = vmatpush3.bf16.xpose.msra.mxu1 %v505_v16 }
 0x1bd   :  { %v4801_v34 = vpack.c.bf16 %v4102_v23, %v4101_v24 }
 0x1be   :  { %v486_v20 = vpop.permute.xlu0 %485  ;;  %v4105_v21 = vpop.permute.xlu1 %4104 }
 0x1bf   :  { %692 = vrot.lane.b32.xlu0 %v4785_v19, %s4566_s1  ;;  %4017 = vmatprep.subr.msk.bf16.mxu1 %vm491_vm1, %v486_v20  ;;  %v508_v28 = vsel %vm491_vm1, %v486_v20, 0  ;;  %v4107_v31 = vunpack.i.h.bf16 %v4105_v21  ;;  %v4106_v32 = vunpack.i.l.bf16 %v4105_v21 }
 0x1c0   :  { %4164 = vrot.lane.b32.xlu1 %v4709_v44, %s4568_s14 }
 0x1c2   :  { %v4110_v26 = vpop.permute.xlu0 %4109  ;;  %v586_v27 = vpop.permute.xlu1 %585 }
 0x1c3   :  { %4169 = vrot.lane.b32.xlu0 %v4697_v36, %s4568_s14  ;;  %4020 = vmatprep.subr.msk.bf16.mxu0 %vm491_vm1, %v586_v27  ;;  %v606_v30 = vsel %vm491_vm1, %v586_v27, 0  ;;  %v4808_v36 = vpack.c.bf16 %v4107_v31, %v4106_v32  ;;  %v4112_v42 = vunpack.i.h.bf16 %v4110_v26  ;;  %v4111_v43 = vunpack.i.l.bf16 %v4110_v26 }
 0x1c4   :  { %791 = vrot.lane.b32.xlu1 %v4792_v22, %s4566_s1  ;;  %3711 = vmatpush3.bf16.xpose.msra.mxu1 %v508_v28 }
 0x1c5   :  { %3725 = vmatpush3.bf16.xpose.msra.mxu0 %v606_v30  ;;  %v4819_v58 = vpack.c.bf16 %v4112_v42, %v4111_v43 }
 0x1c6   :  { %v488_v35 = vpop.permute.xlu0 %487  ;;  %v4115_v38 = vpop.permute.xlu1 %4114 }
 0x1c7   :  { %4018 = vmatprep.subr.msk.bf16.mxu1 %vm491_vm1, %v488_v35  ;;  %888 = vrot.lane.b32.xlu0 %v4801_v34, %s4566_s1  ;;  %v4117_v39 = vunpack.i.h.bf16 %v4115_v38  ;;  %v4116_v41 = vunpack.i.l.bf16 %v4115_v38  ;;  %v511_v47 = vsel %vm491_vm1, %v488_v35, 0 }
 0x1c8   :  { %4174 = vrot.lane.b32.xlu1 %v4717_v48, %s4568_s14 }
 0x1c9   :  { %v4817_v48 = vpack.c.bf16 %v4117_v39, %v4116_v41 }
 0x1ca   :  { %v4120_v44 = vpop.permute.xlu0 %4119  ;;  %v588_v46 = vpop.permute.xlu1 %587 }
 0x1cb   :  { %4179 = vrot.lane.b32.xlu0 %v4725_v52, %s4568_s14  ;;  %4021 = vmatprep.subr.msk.bf16.mxu0 %vm491_vm1, %v588_v46  ;;  %v609_v50 = vsel %vm491_vm1, %v588_v46, 0  ;;  %v4122_v51 = vunpack.i.h.bf16 %v4120_v44  ;;  %v4121_v54 = vunpack.i.l.bf16 %v4120_v44 }
 0x1cc   :  { %793 = vrot.lane.b32.xlu1 %v4808_v36, %s4566_s1  ;;  %3713 = vmatpush3.bf16.xpose.msra.mxu1 %v511_v47 }
 0x1cd   :  { %3727 = vmatpush3.bf16.xpose.msra.mxu0 %v609_v50  ;;  %v4828_v0 = vpack.c.bf16 %v4122_v51, %v4121_v54 }
 0x1ce   :  { %v490_v55 = vpop.permute.xlu0 %489  ;;  %v4125_v56 = vpop.permute.xlu1 %4124 }
 0x1cf   :  { %v4127_v52 = vunpack.i.h.bf16 %v4125_v56  ;;  %v4126_v59 = vunpack.i.l.bf16 %v4125_v56  ;;  %4019 = vmatprep.subr.msk.bf16.mxu1 %vm491_vm1, %v490_v55  ;;  %989 = vrot.lane.b32.xlu0 %v4817_v48, %s4566_s1  ;;  %v514_v4 = vsel %vm491_vm1, %v490_v55, 0 }
 0x1d0   :  { %890 = vrot.lane.b32.xlu1 %v4819_v58, %s4566_s1 }
 0x1d1   :  { %v4826_v60 = vpack.c.bf16 %v4127_v52, %v4126_v59 }
 0x1d2   :  { %v4130_v62 = vpop.permute.xlu0 %4129  ;;  %v590_v63 = vpop.permute.xlu1 %589 }
 0x1d3   :  { %v4132_v2 = vunpack.i.h.bf16 %v4130_v62  ;;  %v4131_v3 = vunpack.i.l.bf16 %v4130_v62  ;;  %4022 = vmatprep.subr.msk.bf16.mxu0 %vm491_vm1, %v590_v63  ;;  %991 = vrot.lane.b32.xlu0 %v4826_v60, %s4566_s1  ;;  %v612_v5 = vsel %vm491_vm1, %v590_v63, 0 }
 0x1d4   :  { %892 = vrot.lane.b32.xlu1 %v4828_v0, %s4566_s1  ;;  %3715 = vmatpush3.bf16.xpose.msra.mxu1 %v514_v4 }
 0x1d5   :  { %3729 = vmatpush3.bf16.xpose.msra.mxu0 %v612_v5  ;;  %v4837_v6 = vpack.c.bf16 %v4132_v2, %v4131_v3 }
 0x1d6   :  { %v4135_v7 = vpop.permute.xlu1 %4134 }
 0x1d7   :  { %v4137_v9 = vunpack.i.h.bf16 %v4135_v7  ;;  %v4136_v10 = vunpack.i.l.bf16 %v4135_v7 }
 0x1d8   :  { %894 = vrot.lane.b32.xlu1 %v4837_v6, %s4566_s1 }
 0x1d9   :  { %v4841_v12 = vpack.c.bf16 %v4137_v9, %v4136_v10 }
 0x1da   :  { %v592_v13 = vpop.permute.xlu1 %591 }
 0x1db   :  { %3717 = vmatmul.mubr.msk.bf16.vlgmr.msra.gmra.mrb[0].mxu1 %vm491_vm1, %v4689_v29  ;;  %993 = vrot.lane.b32.xlu0 %v4841_v12, %s4566_s1  ;;  %v615_v14 = vsel %vm491_vm1, %v592_v13, 0 }
 0x1dc   :  { %4023 = vmatprep.subr.msk.bf16.mxu0 %vm491_vm1, %v592_v13  ;;  %3720 = vmatprep.mubr.msk.bf16.mxu1 %vm491_vm1, %v4695_v33 }
 0x1dd   :  { %3731 = vmatpush3.bf16.xpose.msra.mxu0 %v615_v14 }
 0x1de   :  { %v4145_v15 = vpop.permute.xlu1 %4144 }
 0x1df   :  { %v4147_v16 = vunpack.i.h.bf16 %v4145_v15  ;;  %v4146_v17 = vunpack.i.l.bf16 %v4145_v15 }
 0x1e1   :  { %v4851_v18 = vpack.c.bf16 %v4147_v16, %v4146_v17 }
 0x1e3   :  { %3721 = vmatmul.mubr.msk.bf16.gmra.mrb[4].mxu1 %vm491_vm1, %v4699_v37  ;;  %995 = vrot.lane.b32.xlu0 %v4851_v18, %s4566_s1 }
 0x1e4   :  { %3733 = vmatmul.mubr.msk.bf16.vlgmr.msra.gmra.mrb[16].mxu0 %vm491_vm1, %v4711_v45  ;;  %3748 = vmatprep.mubr.msk.bf16.mxu1 %vm491_vm1, %v4755_v57 }
 0x1e5   :  { %3736 = vmatprep.mubr.msk.bf16.mxu0 %vm491_vm1, %v4719_v49 }
 0x1ec   :  { %3737 = vmatmul.mubr.msk.bf16.gmra.mrb[20].mxu0 %vm491_vm1, %v4727_v53 }
 0x1ed   :  { %3764 = vmatprep.mubr.msk.bf16.mxu0 %vm491_vm1, %v4767_v1 }
 0x215   :  { %v687_v20 = vpop.permute.xlu0 %686 }
 0x216   :  { %4024 = vmatprep.subr.msk.bf16.mxu1 %vm491_vm1, %v687_v20  ;;  %v707_v21 = vsel %vm491_vm1, %v687_v20, 0 }
 0x217   :  { %3741 = vmatpush3.bf16.xpose.msra.mxu1 %v707_v21 }
 0x219   :  { %v4140_v23 = vpop.permute.xlu0 %4139 }
 0x21a   :  { %v4142_v24 = vunpack.i.h.bf16 %v4140_v23  ;;  %v4141_v26 = vunpack.i.l.bf16 %v4140_v23 }
 0x21c   :  { %v4869_v27 = vpack.c.bf16 %v4142_v24, %v4141_v26 }
 0x21d   :  { %v689_v28 = vpop.permute.xlu0 %688 }
 0x21e   :  { %4025 = vmatprep.subr.msk.bf16.mxu1 %vm491_vm1, %v689_v28  ;;  %1090 = vrot.lane.b32.xlu1 %v4869_v27, %s4566_s1  ;;  %v710_v30 = vsel %vm491_vm1, %v689_v28, 0 }
 0x21f   :  { %3743 = vmatpush3.bf16.xpose.msra.mxu1 %v710_v30 }
 0x221   :  { %v4150_v31 = vpop.permute.xlu0 %4149 }
 0x222   :  { %v4152_v32 = vunpack.i.h.bf16 %v4150_v31  ;;  %v4151_v35 = vunpack.i.l.bf16 %v4150_v31 }
 0x224   :  { %v4875_v38 = vpack.c.bf16 %v4152_v32, %v4151_v35 }
 0x225   :  { %v788_v39 = vpop.permute.xlu1 %787 }
 0x226   :  { %1092 = vrot.lane.b32.xlu1 %v4875_v38, %s4566_s1  ;;  %4028 = vmatprep.subr.msk.bf16.mxu0 %vm491_vm1, %v788_v39  ;;  %v808_v41 = vsel %vm491_vm1, %v788_v39, 0 }
 0x227   :  { %3757 = vmatpush3.bf16.xpose.msra.mxu0 %v808_v41 }
 0x229   :  { %v691_v42 = vpop.permute.xlu0 %690  ;;  %v4155_v43 = vpop.permute.xlu1 %4154 }
 0x22a   :  { %v4157_v44 = vunpack.i.h.bf16 %v4155_v43  ;;  %v4156_v46 = vunpack.i.l.bf16 %v4155_v43  ;;  %4026 = vmatprep.subr.msk.bf16.mxu1 %vm491_vm1, %v691_v42  ;;  %v713_v47 = vsel %vm491_vm1, %v691_v42, 0 }
 0x22b   :  { %3745 = vmatpush3.bf16.xpose.msra.mxu1 %v713_v47 }
 0x22c   :  { %v4883_v50 = vpack.c.bf16 %v4157_v44, %v4156_v46 }
 0x22d   :  { %v4160_v51 = vpop.permute.xlu0 %4159 }
 0x22e   :  { %v4162_v54 = vunpack.i.h.bf16 %v4160_v51  ;;  %v4161_v55 = vunpack.i.l.bf16 %v4160_v51  ;;  %v790_v56 = vpop.permute.xlu1 %789  ;;  %1191 = vrot.lane.b32.xlu0 %v4883_v50, %s4566_s1 }
 0x22f   :  { %4029 = vmatprep.subr.msk.bf16.mxu0 %vm491_vm1, %v790_v56  ;;  %v811_v52 = vsel %vm491_vm1, %v790_v56, 0 }
 0x230   :  { %3759 = vmatpush3.bf16.xpose.msra.mxu0 %v811_v52  ;;  %v4889_v59 = vpack.c.bf16 %v4162_v54, %v4161_v55 }
 0x231   :  { %v693_v62 = vpop.permute.xlu0 %692 }
 0x232   :  { %v4165_v63 = vpop.permute.xlu1 %4164  ;;  %4027 = vmatprep.subr.msk.bf16.mxu1 %vm491_vm1, %v693_v62  ;;  %1094 = vrot.lane.b32.xlu1 %v4889_v59, %s4566_s1  ;;  %v716_v2 = vsel %vm491_vm1, %v693_v62, 0 }
 0x233   :  { %v4167_v3 = vunpack.i.h.bf16 %v4165_v63  ;;  %v4166_v4 = vunpack.i.l.bf16 %v4165_v63  ;;  %3747 = vmatpush3.bf16.xpose.msra.mxu1 %v716_v2 }
 0x235   :  { %v4170_v5 = vpop.permute.xlu0 %4169  ;;  %v4895_v7 = vpack.c.bf16 %v4167_v3, %v4166_v4 }
 0x236   :  { %v4172_v9 = vunpack.i.h.bf16 %v4170_v5  ;;  %v4171_v10 = vunpack.i.l.bf16 %v4170_v5  ;;  %v792_v13 = vpop.permute.xlu1 %791 }
 0x237   :  { %4030 = vmatprep.subr.msk.bf16.mxu0 %vm491_vm1, %v792_v13  ;;  %1193 = vrot.lane.b32.xlu0 %v4895_v7, %s4566_s1  ;;  %v814_v14 = vsel %vm491_vm1, %v792_v13, 0 }
 0x238   :  { %3761 = vmatpush3.bf16.xpose.msra.mxu0 %v814_v14  ;;  %v4901_v15 = vpack.c.bf16 %v4172_v9, %v4171_v10 }
 0x239   :  { %v889_v16 = vpop.permute.xlu0 %888 }
 0x23a   :  { %v4175_v17 = vpop.permute.xlu1 %4174  ;;  %3749 = vmatmul.mubr.msk.bf16.vlgmr.msra.gmra.mrb[8].mxu1 %vm491_vm1, %v4761_v61  ;;  %4032 = vmatprep.subr.msk.bf16.mxu1 %vm491_vm1, %v889_v16  ;;  %v909_v20 = vsel %vm491_vm1, %v889_v16, 0 }
 0x23b   :  { %v4177_v21 = vunpack.i.h.bf16 %v4175_v17  ;;  %v4176_v23 = vunpack.i.l.bf16 %v4175_v17  ;;  %1096 = vrot.lane.b32.xlu1 %v4901_v15, %s4566_s1  ;;  %3752 = vmatprep.mubr.msk.bf16.mxu1 %vm491_vm1, %v4771_v8 }
 0x23c   :  { %3773 = vmatpush3.bf16.xpose.msra.mxu1 %v909_v20 }
 0x23d   :  { %v4180_v24 = vpop.permute.xlu0 %4179  ;;  %v4911_v26 = vpack.c.bf16 %v4177_v21, %v4176_v23 }
 0x23e   :  { %v4182_v28 = vunpack.i.h.bf16 %v4180_v24  ;;  %v4181_v30 = vunpack.i.l.bf16 %v4180_v24  ;;  %v794_v31 = vpop.permute.xlu1 %793 }
 0x23f   :  { %4031 = vmatprep.subr.msk.bf16.mxu0 %vm491_vm1, %v794_v31  ;;  %1195 = vrot.lane.b32.xlu0 %v4911_v26, %s4566_s1  ;;  %v817_v32 = vsel %vm491_vm1, %v794_v31, 0 }
 0x240   :  { %3763 = vmatpush3.bf16.xpose.msra.mxu0 %v817_v32  ;;  %v4917_v35 = vpack.c.bf16 %v4182_v28, %v4181_v30 }
 0x241   :  { %v990_v39 = vpop.permute.xlu0 %989 }
 0x242   :  { %v891_v41 = vpop.permute.xlu1 %890  ;;  %3753 = vmatmul.mubr.msk.bf16.gmra.mrb[12].mxu1 %vm491_vm1, %v4785_v19  ;;  %1197 = vrot.lane.b32.xlu1 %v4917_v35, %s4566_s1 }
 0x243   :  { %4033 = vmatprep.subr.msk.bf16.mxu1 %vm491_vm1, %v891_v41  ;;  %4036 = vmatprep.subr.msk.bf16.mxu0 %vm491_vm1, %v990_v39  ;;  %v912_v42 = vsel %vm491_vm1, %v891_v41, 0 }
 0x244   :  { %1707 = vrot.lane.b32.xlu0 %v4689_v29, %s4569_s15  ;;  %3775 = vmatpush3.bf16.xpose.msra.mxu1 %v912_v42  ;;  %v1010_v29 = vsel %vm491_vm1, %v990_v39, 0 }
 0x245   :  { %3780 = vmatprep.mubr.msk.bf16.mxu1 %vm491_vm1, %v4801_v34  ;;  %v992_v44 = vpop.permute.xlu0 %991 }
 0x246   :  { %v893_v43 = vpop.permute.xlu1 %892  ;;  %1705 = vrot.lane.b32.xlu1 %v4681_v25, %s4569_s15 }
 0x247   :  { %3765 = vmatmul.mubr.msk.bf16.vlgmr.msra.gmra.mrb[24].mxu0 %vm491_vm1, %v4777_v11  ;;  %4034 = vmatprep.subr.msk.bf16.mxu1 %vm491_vm1, %v893_v43  ;;  %v915_v25 = vsel %vm491_vm1, %v893_v43, 0 }
 0x248   :  { %1713 = vrot.lane.b32.xlu0 %v4701_v40, %s4569_s15  ;;  %3768 = vmatprep.mubr.msk.bf16.mxu0 %vm491_vm1, %v4792_v22 }
 0x249   :  { %3789 = vmatpush3.bf16.xpose.msra.mxu0 %v1010_v29 }
 0x24a   :  { %4037 = vmatprep.subr.msk.bf16.mxu0 %vm491_vm1, %v992_v44  ;;  %1709 = vrot.lane.b32.xlu1 %v4695_v33, %s4569_s15  ;;  %v895_v46 = vpop.permute.xlu1 %894  ;;  %v1013_v33 = vsel %vm491_vm1, %v992_v44, 0 }
 0x24c   :  { %1715 = vrot.lane.b32.xlu0 %v4711_v45, %s4569_s15  ;;  %3777 = vmatpush3.bf16.xpose.msra.mxu1 %v915_v25 }
 0x24d   :  { %4035 = vmatprep.subr.msk.bf16.mxu1 %vm491_vm1, %v895_v46  ;;  %v994_v40 = vpop.permute.xlu0 %993 }
 0x24e   :  { %1711 = vrot.lane.b32.xlu1 %v4699_v37, %s4569_s15  ;;  %v918_v37 = vsel %vm491_vm1, %v895_v46, 0 }
 0x24f   :  { %3769 = vmatmul.mubr.msk.bf16.gmra.mrb[28].mxu0 %vm491_vm1, %v4808_v36 }
 0x250   :  { %1721 = vrot.lane.b32.xlu0 %v4755_v57, %s4569_s15  ;;  %3796 = vmatprep.mubr.msk.bf16.mxu0 %vm491_vm1, %v4817_v48  ;;  %v1016_v57 = vsel %vm491_vm1, %v994_v40, 0 }
 0x251   :  { %3791 = vmatpush3.bf16.xpose.msra.mxu0 %v1013_v33 }
 0x252   :  { %4038 = vmatprep.subr.msk.bf16.mxu0 %vm491_vm1, %v994_v40  ;;  %1717 = vrot.lane.b32.xlu1 %v4719_v49, %s4569_s15 }
 0x254   :  { %1723 = vrot.lane.b32.xlu0 %v4761_v61, %s4569_s15  ;;  %3779 = vmatpush3.bf16.xpose.msra.mxu1 %v918_v37 }
 0x255   :  { %v996_v45 = vpop.permute.xlu0 %995 }
 0x256   :  { %1719 = vrot.lane.b32.xlu1 %v4727_v53, %s4569_s15  ;;  %v1019_v49 = vsel %vm491_vm1, %v996_v45, 0 }
 0x258   :  { %1729 = vrot.lane.b32.xlu0 %v4767_v1, %s4569_s15 }
 0x259   :  { %3793 = vmatpush3.bf16.xpose.msra.mxu0 %v1016_v57 }
 0x25a   :  { %1725 = vrot.lane.b32.xlu1 %v4771_v8, %s4569_s15  ;;  %4039 = vmatprep.subr.msk.bf16.mxu0 %vm491_vm1, %v996_v45 }
 0x25b   :  { %3781 = vmatmul.mubr.msk.bf16.vlgmr.msra.gmra.mrb[16].mxu1 %vm491_vm1, %v4819_v58 }
 0x25c   :  { %1731 = vrot.lane.b32.xlu0 %v4777_v11, %s4569_s15  ;;  %3784 = vmatprep.mubr.msk.bf16.mxu1 %vm491_vm1, %v4828_v0 }
 0x25e   :  { %1727 = vrot.lane.b32.xlu1 %v4785_v19, %s4569_s15 }
 0x260   :  { %1737 = vrot.lane.b32.xlu0 %v4801_v34, %s4569_s15 }
 0x261   :  { %3795 = vmatpush3.bf16.xpose.msra.mxu0 %v1019_v49 }
 0x262   :  { %1733 = vrot.lane.b32.xlu1 %v4792_v22, %s4569_s15 }
 0x263   :  { %3785 = vmatmul.mubr.msk.bf16.gmra.mrb[20].mxu1 %vm491_vm1, %v4837_v6 }
 0x264   :  { %1739 = vrot.lane.b32.xlu0 %v4819_v58, %s4569_s15  ;;  %3812 = vmatprep.mubr.msk.bf16.mxu1 %vm491_vm1, %v4869_v27 }
 0x266   :  { %1741 = vrot.lane.b32.xlu1 %v4828_v0, %s4569_s15 }
 0x268   :  { %1745 = vrot.lane.b32.xlu0 %v4817_v48, %s4569_s15  ;;  %3797 = vmatmul.mubr.msk.bf16.vlgmr.msra.gmra.mrb[32].mxu0 %vm491_vm1, %v4826_v60 }
 0x269   :  { %3800 = vmatprep.mubr.msk.bf16.mxu0 %vm491_vm1, %v4841_v12 }
 0x26a   :  { %1743 = vrot.lane.b32.xlu1 %v4837_v6, %s4569_s15 }
 0x26c   :  { %1747 = vrot.lane.b32.xlu0 %v4826_v60, %s4569_s15 }
 0x26e   :  { %1749 = vrot.lane.b32.xlu1 %v4841_v12, %s4569_s15 }
 0x270   :  { %1753 = vrot.lane.b32.xlu0 %v4869_v27, %s4569_s15  ;;  %3801 = vmatmul.mubr.msk.bf16.gmra.mrb[36].mxu0 %vm491_vm1, %v4851_v18 }
 0x271   :  { %3828 = vmatprep.mubr.msk.bf16.mxu0 %vm491_vm1, %v4883_v50 }
 0x272   :  { %1757 = vrot.lane.b32.xlu1 %v4889_v59, %s4569_s15 }
 0x274   :  { %1755 = vrot.lane.b32.xlu0 %v4875_v38, %s4569_s15 }
 0x276   :  { %1761 = vrot.lane.b32.xlu1 %v4883_v50, %s4569_s15 }
 0x27a   :  { %1759 = vrot.lane.b32.xlu1 %v4901_v15, %s4569_s15 }
 0x27e   :  { %1763 = vrot.lane.b32.xlu1 %v4895_v7, %s4569_s15 }
 0x282   :  { %1735 = vrot.lane.b32.xlu1 %v4808_v36, %s4569_s15 }
 0x286   :  { %1751 = vrot.lane.b32.xlu1 %v4851_v18, %s4569_s15 }
 0x290   :  { %v1091_v53 = vpop.permute.xlu1 %1090 }
 0x291   :  { %4040 = vmatprep.subr.msk.bf16.mxu1 %vm491_vm1, %v1091_v53  ;;  %v1111_v61 = vsel %vm491_vm1, %v1091_v53, 0 }
 0x292   :  { %3805 = vmatpush3.bf16.xpose.msra.mxu1 %v1111_v61 }
 0x298   :  { %v1093_v1 = vpop.permute.xlu1 %1092 }
 0x299   :  { %4041 = vmatprep.subr.msk.bf16.mxu1 %vm491_vm1, %v1093_v1  ;;  %v1114_v8 = vsel %vm491_vm1, %v1093_v1, 0 }
 0x29a   :  { %3807 = vmatpush3.bf16.xpose.msra.mxu1 %v1114_v8 }
 0x2a0   :  { %v1192_v11 = vpop.permute.xlu0 %1191 }
 0x2a1   :  { %4044 = vmatprep.subr.msk.bf16.mxu0 %vm491_vm1, %v1192_v11  ;;  %v1212_v19 = vsel %vm491_vm1, %v1192_v11, 0 }
 0x2a2   :  { %3821 = vmatpush3.bf16.xpose.msra.mxu0 %v1212_v19 }
 0x2a4   :  { %v1095_v22 = vpop.permute.xlu1 %1094 }
 0x2a5   :  { %4042 = vmatprep.subr.msk.bf16.mxu1 %vm491_vm1, %v1095_v22  ;;  %v1117_v34 = vsel %vm491_vm1, %v1095_v22, 0 }
 0x2a6   :  { %3809 = vmatpush3.bf16.xpose.msra.mxu1 %v1117_v34 }
 0x2a9   :  { %v1194_v36 = vpop.permute.xlu0 %1193 }
 0x2aa   :  { %4045 = vmatprep.subr.msk.bf16.mxu0 %vm491_vm1, %v1194_v36  ;;  %v1215_v48 = vsel %vm491_vm1, %v1194_v36, 0 }
 0x2ab   :  { %3823 = vmatpush3.bf16.xpose.msra.mxu0 %v1215_v48 }
 0x2ad   :  { %v1097_v58 = vpop.permute.xlu1 %1096 }
 0x2ae   :  { %4043 = vmatprep.subr.msk.bf16.mxu1 %vm491_vm1, %v1097_v58  ;;  %v5034_v60 = vpop.f32.mrb[0].mxu1  ;;  %v1120_v0 = vsel %vm491_vm1, %v1097_v58, 0 }
 0x2af   :  { %3811 = vmatpush3.bf16.xpose.msra.mxu1 %v1120_v0  ;;  %v5037_v6 = vpop.f32.mrb[1].mxu1  ;;  %v1295_v12 = vsel %vm1288_vm2, %v5034_v60, -inf }
 0x2b0   :  { %v5041_v18 = vpop.f32.mrb[2].mxu1  ;;  %1296 = vmax.xlane.f32.xlu0 %v1295_v12  ;;  %v1289_v54 = vsel %vm1288_vm2, %v5037_v6, -inf }
 0x2b1   :  { %v1196_v27 = vpop.permute.xlu0 %1195  ;;  %v5043_v47 = vpop.f32.mrb[3].mxu1  ;;  %v1298_v3 = vsel %vm1288_vm2, %v5041_v18, -inf }
 0x2b2   :  { %4046 = vmatprep.subr.msk.bf16.mxu0 %vm491_vm1, %v1196_v27  ;;  %v1218_v50 = vsel %vm491_vm1, %v1196_v27, 0  ;;  %v1292_v51 = vsel %vm1288_vm2, %v5043_v47, -inf }
 0x2b3   :  { %3825 = vmatpush3.bf16.xpose.msra.mxu0 %v1218_v50  ;;  %1293 = vmax.xlane.f32.xlu1 %v1292_v51 }
 0x2b4   :  { %v1198_v55 = vpop.permute.xlu1 %1197  ;;  %1290 = vmax.xlane.f32.xlu0 %v1289_v54 }
 0x2b5   :  { %4047 = vmatprep.subr.msk.bf16.mxu0 %vm491_vm1, %v1198_v55 }
 0x2b6   :  { %v1708_v56 = vpop.permute.xlu0 %1707  ;;  %3813 = vmatmul.mubr.msk.bf16.vlgmr.msra.gmra.mrb[24].mxu1 %vm491_vm1, %v4875_v38  ;;  %v5054_v52 = vpop.f32.mrb[4].mxu1 }
 0x2b7   :  { %v5056_v62 = vpop.f32.mrb[16].mxu0  ;;  %3816 = vmatprep.mubr.msk.bf16.mxu1 %vm491_vm1, %v4889_v59  ;;  %v5060_v63 = vpop.f32.mrb[5].mxu1  ;;  %v1307_v2 = vsel %vm1288_vm2, %v5054_v52, -inf  ;;  %v1221_v59 = vsel %vm491_vm1, %v1198_v55, 0  ;;  %v1774_v24 = vsel %vm491_vm1, %v1708_v56, 1065369472 }
 0x2b8   :  { %v5066_v4 = vpop.f32.mrb[17].mxu0  ;;  %v5068_v5 = vpop.f32.mrb[6].mxu1  ;;  %1308 = vmax.xlane.f32.xlu1 %v1307_v2  ;;  %1299 = vmax.xlane.f32.xlu0 %v1298_v3  ;;  %v1301_v20 = vsel %vm1288_vm2, %v5060_v63, -inf  ;;  %v1319_v32 = vsel %vm1288_vm2, %v5056_v62, -inf }
 0x2b9   :  { %v5070_v38 = vpop.f32.mrb[18].mxu0  ;;  %v1706_v9 = vpop.permute.xlu1 %1705  ;;  %v1310_v21 = vsel %vm1288_vm2, %v5068_v5, -inf  ;;  %v1313_v25 = vsel %vm1288_vm2, %v5066_v4, -inf }
 0x2ba   :  { %v1714_v10 = vpop.permute.xlu0 %1713  ;;  %v5072_v13 = vpop.f32.mrb[7].mxu1  ;;  %v1771_v14 = vsel %vm491_vm1, %v1706_v9, 1065369472  ;;  %v1322_v46 = vsel %vm1288_vm2, %v5070_v38, -inf }
 0x2bb   :  { %v5076_v16 = vpop.f32.mrb[19].mxu0  ;;  %3827 = vmatpush3.bf16.xpose.msra.mxu0 %v1221_v59  ;;  %3836 = vmatprep.subr.bf16.mxu1 %v1771_v14  ;;  %v1783_v17 = vsel %vm491_vm1, %v1714_v10, 1065369472  ;;  %v1304_v39 = vsel %vm1288_vm2, %v5072_v13, -inf }
 0x2bc   :  { %3837 = vmatpush3.bf16.msra.mxu1 %v1771_v14  ;;  %3852 = vmatprep.subr.bf16.mxu0 %v1783_v17  ;;  %v1316_v57 = vsel %vm1288_vm2, %v5076_v16, -inf }
 0x2bd   :  { %v1710_v23 = vpop.permute.xlu1 %1709  ;;  %1302 = vmax.xlane.f32.xlu1 %v1301_v20  ;;  %1311 = vmax.xlane.f32.xlu0 %v1310_v21 }
 0x2be   :  { %3838 = vmatprep.subr.bf16.mxu1 %v1774_v24  ;;  %v1716_v28 = vpop.permute.xlu0 %1715  ;;  %3817 = vmatmul.mubr.msk.bf16.gmra.mrb[28].mxu1 %vm491_vm1, %v4901_v15  ;;  %v1777_v43 = vsel %vm491_vm1, %v1710_v23, 1065369472 }
 0x2bf   :  { %v5086_v30 = vpop.f32.mrb[20].mxu0  ;;  %v1786_v44 = vsel %vm491_vm1, %v1716_v28, 1065369472 }
 0x2c0   :  { %v5088_v31 = vpop.f32.mrb[21].mxu0  ;;  %3839 = vmatpush3.bf16.msra.mxu1 %v1774_v24  ;;  %v1331_v11 = vsel %vm1288_vm2, %v5086_v30, -inf }
 0x2c1   :  { %v5094_v41 = vpop.f32.mrb[22].mxu0  ;;  %v1712_v42 = vpop.permute.xlu1 %1711  ;;  %1320 = vmax.xlane.f32.xlu1 %v1319_v32  ;;  %1305 = vmax.xlane.f32.xlu0 %v1304_v39  ;;  %v1325_v45 = vsel %vm1288_vm2, %v5088_v31, -inf }
 0x2c2   :  { %3840 = vmatprep.subr.bf16.mxu1 %v1777_v43  ;;  %v1722_v15 = vpop.permute.xlu0 %1721  ;;  %v5097_v29 = vpop.f32.mrb[23].mxu0  ;;  %3829 = vmatmul.mubr.msk.bf16.vlgmr.msra.gmra.mrb[40].mxu0 %vm491_vm1, %v4895_v7  ;;  %v1780_v40 = vsel %vm491_vm1, %v1712_v42, 1065369472  ;;  %v1334_v8 = vsel %vm1288_vm2, %v5094_v41, -inf }
 0x2c3   :  { %3832 = vmatprep.mubr.msk.bf16.mxu0 %vm491_vm1, %v4911_v26  ;;  %3853 = vmatpush3.bf16.msra.mxu0 %v1783_v17  ;;  %v5117_v53 = vsel %vm491_vm1, %v1722_v15, 1065369472  ;;  %v1328_v22 = vsel %vm1288_vm2, %v5097_v29, -inf }
 0x2c4   :  { %3841 = vmatpush3.bf16.msra.mxu1 %v1777_v43  ;;  %3854 = vmatprep.subr.bf16.mxu0 %v1786_v44 }
 0x2c5   :  { %v1718_v33 = vpop.permute.xlu1 %1717  ;;  %1314 = vmax.xlane.f32.xlu1 %v1313_v25  ;;  %1323 = vmax.xlane.f32.xlu0 %v1322_v46 }
 0x2c6   :  { %3842 = vmatprep.subr.bf16.mxu1 %v1780_v40  ;;  %v5109_v7 = vpop.permute.xlu0 %1723  ;;  %v1789_v37 = vsel %vm491_vm1, %v1718_v33, 1065369472 }
 0x2c7   :  { %3855 = vmatpush3.bf16.msra.mxu0 %v1786_v44 }
 0x2c8   :  { %3843 = vmatpush3.bf16.msra.mxu1 %v1780_v40  ;;  %3856 = vmatprep.subr.bf16.mxu0 %v1789_v37 }
 0x2c9   :  { %v1720_v49 = vpop.permute.xlu1 %1719  ;;  %1326 = vmax.xlane.f32.xlu1 %v1325_v45  ;;  %1317 = vmax.xlane.f32.xlu0 %v1316_v57 }
 0x2ca   :  { %3868 = vmatprep.subr.bf16.mxu1 %v5117_v53  ;;  %3833 = vmatmul.mubr.msk.bf16.gmra.mrb[44].mxu0 %vm491_vm1, %v4917_v35  ;;  %v1792_v61 = vsel %vm491_vm1, %v1720_v49, 1065369472  ;;  %v1730_v1 = vpop.permute.xlu0 %1729 }
 0x2cb   :  { %3857 = vmatpush3.bf16.msra.mxu0 %v1789_v37  ;;  %v5128_v19 = vsel %vm491_vm1, %v1730_v1, 1065369472 }
 0x2cc   :  { %3858 = vmatprep.subr.bf16.mxu0 %v1792_v61 }
 0x2cd   :  { %1335 = vmax.xlane.f32.xlu1 %v1334_v8  ;;  %1332 = vmax.xlane.f32.xlu0 %v1331_v11  ;;  %v5133_v34 = vpop.permute.xlu1 %1725 }
 0x2ce   :  { %v5155_v56 = vpop.permute.xlu0 %1731 }
 0x2cf   :  { %3859 = vmatpush3.bf16.msra.mxu0 %v1792_v61 }
 0x2d0   :  { %3884 = vmatprep.subr.bf16.mxu0 %v5128_v19 }
 0x2d1   :  { %1329 = vmax.xlane.f32.xlu0 %v1328_v22  ;;  %v5135_v36 = vpop.permute.xlu1 %1727 }
 0x2d2   :  { %v5175_v23 = vpop.permute.xlu0 %1737 }
 0x2d5   :  { %v5137_v48 = vpop.permute.xlu1 %1733 }
 0x2d6   :  { %v5191_v44 = vpop.permute.xlu0 %1739 }
 0x2d9   :  { %v5139_v58 = vpop.permute.xlu1 %1741 }
 0x2da   :  { %v5209_v61 = vpop.permute.xlu0 %1745 }
 0x2dd   :  { %v5151_v54 = vpop.permute.xlu1 %1743 }
 0x2de   :  { %6047 = vst [vmem:[#allocation15_spill] sm:$0xff] %v5151_v54  ;;  %v5217_v22 = vpop.permute.xlu0 %1747 }
 0x2df   :  { %6053 = vst [vmem:[#allocation21_spill] sm:$0xff] %v5217_v22 }
 0x2e1   :  { %v5167_v14 = vpop.permute.xlu1 %1749 }
 0x2e2   :  { %6048 = vst [vmem:[#allocation16_spill] sm:$0xff] %v5167_v14 }
 0x2e5   :  { %v5185_v42 = vpop.permute.xlu1 %1757 }
 0x2e6   :  { %6049 = vst [vmem:[#allocation17_spill] sm:$0xff] %v5185_v42 }
 0x2e9   :  { %v5199_v40 = vpop.permute.xlu1 %1761 }
 0x2ea   :  { %6050 = vst [vmem:[#allocation18_spill] sm:$0xff] %v5199_v40 }
 0x2ed   :  { %v5213_v8 = vpop.permute.xlu1 %1759 }
 0x2ee   :  { %6052 = vst [vmem:[#allocation20_spill] sm:$0xff] %v5213_v8 }
 0x30d   :  { %v5141_v0 = vpop.f32.mrb[8].mxu1 }
 0x30e   :  { %v5143_v12 = vpop.f32.mrb[9].mxu1  ;;  %v1343_v27 = vsel %vm1288_vm2, %v5141_v0, -inf }
 0x30f   :  { %v5147_v50 = vpop.f32.mrb[10].mxu1  ;;  %1344 = vmax.xlane.f32.xlu0 %v1343_v27  ;;  %v1337_v55 = vsel %vm1288_vm2, %v5143_v12, -inf }
 0x310   :  { %v5149_v51 = vpop.f32.mrb[11].mxu1  ;;  %v1346_v9 = vsel %vm1288_vm2, %v5147_v50, -inf }
 0x311   :  { %v1340_v21 = vsel %vm1288_vm2, %v5149_v51, -inf }
 0x313   :  { %1338 = vmax.xlane.f32.xlu0 %v1337_v55 }
 0x315   :  { %v5157_v2 = vpop.f32.mrb[12].mxu1 }
 0x316   :  { %v5159_v3 = vpop.f32.mrb[13].mxu1  ;;  %v1355_v43 = vsel %vm1288_vm2, %v5157_v2, -inf }
 0x317   :  { %v5163_v10 = vpop.f32.mrb[14].mxu1  ;;  %1347 = vmax.xlane.f32.xlu0 %v1346_v9  ;;  %v1349_v59 = vsel %vm1288_vm2, %v5159_v3, -inf }
 0x318   :  { %v5169_v17 = vpop.f32.mrb[15].mxu1  ;;  %1350 = vmax.xlane.f32.xlu1 %v1349_v59  ;;  %v1358_v46 = vsel %vm1288_vm2, %v5163_v10, -inf }
 0x319   :  { %v1352_v49 = vsel %vm1288_vm2, %v5169_v17, -inf }
 0x31a   :  { %v5171_v20 = vpop.f32.mrb[24].mxu0 }
 0x31b   :  { %v5177_v24 = vpop.f32.mrb[25].mxu0  ;;  %1341 = vmax.xlane.f32.xlu0 %v1340_v21  ;;  %v1367_v28 = vsel %vm1288_vm2, %v5171_v20, -inf  ;;  %v5227_v21 = vpop.permute.xlu1 %1763 }
 0x31c   :  { %v5181_v32 = vpop.f32.mrb[26].mxu0  ;;  %1368 = vmax.xlane.f32.xlu1 %v1367_v28  ;;  %v1361_v11 = vsel %vm1288_vm2, %v5177_v24, -inf  ;;  %6055 = vst [vmem:[#allocation23_spill] sm:$0xff] %v5227_v21 }
 0x31d   :  { %v5183_v39 = vpop.f32.mrb[27].mxu0  ;;  %v1370_v55 = vsel %vm1288_vm2, %v5181_v32, -inf }
 0x31e   :  { %v1364_v15 = vsel %vm1288_vm2, %v5183_v39, -inf }
 0x31f   :  { %1356 = vmax.xlane.f32.xlu0 %v1355_v43 }
 0x320   :  { %1365 = vmax.xlane.f32.xlu1 %v1364_v15 }
 0x322   :  { %v5193_v25 = vpop.f32.mrb[28].mxu0 }
 0x323   :  { %v5197_v33 = vpop.f32.mrb[29].mxu0  ;;  %1359 = vmax.xlane.f32.xlu0 %v1358_v46  ;;  %v1379_v15 = vsel %vm1288_vm2, %v5193_v25, -inf  ;;  %v5235_v46 = vpop.permute.xlu0 %1753 }
 0x324   :  { %v5201_v37 = vpop.f32.mrb[30].mxu0  ;;  %v1373_v45 = vsel %vm1288_vm2, %v5197_v33, -inf  ;;  %6058 = vst [vmem:[#allocation26_spill] sm:$0xff] %v5235_v46 }
 0x325   :  { %v5205_v57 = vpop.f32.mrb[31].mxu0  ;;  %1374 = vmax.xlane.f32.xlu1 %v1373_v45  ;;  %v1382_v1 = vsel %vm1288_vm2, %v5201_v37, -inf }
 0x326   :  { %6051 = vst [vmem:[#allocation19_spill] sm:$0xff] %v5205_v57 }
 0x327   :  { %1353 = vmax.xlane.f32.xlu0 %v1352_v49  ;;  %v5239_v49 = vpop.permute.xlu1 %1735  ;;  %v5251_v8 = vpop.permute.xlu0 %1755 }
 0x328   :  { %6060 = vst [vmem:[#allocation28_spill] sm:$0xff] %v5251_v8 }
 0x329   :  { %1383 = vmax.xlane.f32.xlu1 %v1382_v1 }
 0x32b   :  { %1362 = vmax.xlane.f32.xlu0 %v1361_v11  ;;  %v1376_v11 = vsel %vm1288_vm2, %v5205_v57, -inf  ;;  %v5261_v14 = vpop.permute.xlu1 %1751 }
 0x32c   :  { %6063 = vst [vmem:[#allocation31_spill] sm:$0xff] %v5261_v14 }
 0x32e   :  { %v5219_v27 = vpop.f32.mrb[16].mxu1 }
 0x32f   :  { %v5223_v9 = vpop.f32.mrb[17].mxu1  ;;  %v1391_v59 = vsel %vm1288_vm2, %v5219_v27, -inf  ;;  %1371 = vmax.xlane.f32.xlu0 %v1370_v55 }
 0x330   :  { %6054 = vst [vmem:[#allocation22_spill] sm:$0xff] %v5223_v9  ;;  %v5229_v28 = vpop.f32.mrb[18].mxu1  ;;  %1392 = vmax.xlane.f32.xlu1 %v1391_v59  ;;  %v1385_v45 = vsel %vm1288_vm2, %v5223_v9, -inf }
 0x331   :  { %6056 = vst [vmem:[#allocation24_spill] sm:$0xff] %v5229_v28  ;;  %v5231_v43 = vpop.f32.mrb[19].mxu1  ;;  %v1394_v59 = vsel %vm1288_vm2, %v5229_v28, -inf }
 0x332   :  { %6057 = vst [vmem:[#allocation25_spill] sm:$0xff] %v5231_v43 }
 0x333   :  { %1380 = vmax.xlane.f32.xlu0 %v1379_v15 }
 0x334   :  { %1386 = vmax.xlane.f32.xlu1 %v1385_v45  ;;  %v1388_v45 = vsel %vm1288_vm2, %v5231_v43, -inf }
 0x336   :  { %v5241_v1 = vpop.f32.mrb[20].mxu1 }
 0x337   :  { %v5245_v55 = vpop.f32.mrb[21].mxu1  ;;  %1377 = vmax.xlane.f32.xlu0 %v1376_v11  ;;  %v1403_v46 = vsel %vm1288_vm2, %v5241_v1, -inf }
 0x338   :  { %6059 = vst [vmem:[#allocation27_spill] sm:$0xff] %v5245_v55  ;;  %v5249_v21 = vpop.f32.mrb[22].mxu1  ;;  %1395 = vmax.xlane.f32.xlu1 %v1394_v59  ;;  %v1397_v40 = vsel %vm1288_vm2, %v5245_v55, -inf }
 0x339   :  { %v5253_v15 = vpop.f32.mrb[23].mxu1  ;;  %v1406_v57 = vsel %vm1288_vm2, %v5249_v21, -inf }
 0x33a   :  { %6061 = vst [vmem:[#allocation29_spill] sm:$0xff] %v5253_v15 }
 0x33b   :  { %v5257_v42 = vpop.f32.mrb[32].mxu0  ;;  %1389 = vmax.xlane.f32.xlu0 %v1388_v45 }
 0x33c   :  { %6062 = vst [vmem:[#allocation30_spill] sm:$0xff] %v5257_v42  ;;  %v5263_v22 = vpop.f32.mrb[33].mxu0  ;;  %1398 = vmax.xlane.f32.xlu1 %v1397_v40  ;;  %v1415_v43 = vsel %vm1288_vm2, %v5257_v42, -inf }
 0x33d   :  { %v5265_v11 = vpop.f32.mrb[34].mxu0  ;;  %v1297_v59 = vpop.xlane.xlu0 %1296 }
 0x33e   :  { %v5267_v8 = vpop.f32.mrb[35].mxu0  ;;  %v1483_v28 = vsub.f32 %v5034_v60, %v1297_v59  ;;  %v1400_v59 = vsel %vm1288_vm2, %v5253_v15, -inf }
 0x33f   :  { %6064 = vst [vmem:[#allocation32_spill] sm:$0xff] %v5267_v8  ;;  %1404 = vmax.xlane.f32.xlu0 %v1403_v46  ;;  %v1412_v46 = vsel %vm1288_vm2, %v5267_v8, -inf }
 0x340   :  { %1416 = vmax.xlane.f32.xlu1 %v1415_v43  ;;  %v1294_v55 = vpop.xlane.xlu1 %1293 }
 0x341   :  { %v1482_v45 = vsub.f32 %v5043_v47, %v1294_v55  ;;  %v1291_v14 = vpop.xlane.xlu0 %1290  ;;  %v1549_v55 = vmul.f32 1.442695, %v1483_v28 }
 0x342   :  { %v1481_v40 = vsub.f32 %v5037_v6, %v1291_v14 }
 0x343   :  { %v1547_v9 = vmul.f32 1.442695, %v1482_v45  ;;  %v5278_v54 = vpop.f32.mrb[36].mxu0  ;;  %1407 = vmax.xlane.f32.xlu0 %v1406_v57 }
 0x344   :  { %v1545_v42 = vmul.f32 1.442695, %v1481_v40  ;;  %v5282_v43 = vpop.f32.mrb[37].mxu0  ;;  %1413 = vmax.xlane.f32.xlu1 %v1412_v46 }
 0x345   :  { %6065 = vst [vmem:[#allocation33_spill] sm:$0xff] %v5282_v43  ;;  %4185 = vpow2.f32 %v1547_v9  ;;  %v5284_v47 = vpop.f32.mrb[38].mxu0  ;;  %v1309_v60 = vpop.xlane.xlu1 %1308  ;;  %v1421_v40 = vsel %vm1288_vm2, %v5282_v43, -inf }
 0x346   :  { %4187 = vpow2.f32 %v1545_v42  ;;  %v5286_v6 = vpop.f32.mrb[39].mxu0  ;;  %v1300_v14 = vpop.xlane.xlu0 %1299  ;;  %v1487_v57 = vsub.f32 %v5054_v52, %v1309_v60  ;;  %v1409_v42 = vsel %vm1288_vm2, %v5263_v22, -inf  ;;  %v1430_v8 = vsel %vm1288_vm2, %v5284_v47, -inf }
 0x347   :  { %v1484_v45 = vsub.f32 %v5041_v18, %v1300_v14  ;;  %1401 = vmax.xlane.f32.xlu0 %v1400_v59  ;;  %4189 = vpow2.f32 %v1549_v55  ;;  %v1418_v55 = vsel %vm1288_vm2, %v5265_v11, -inf }
 0x348   :  { %1422 = vmax.xlane.f32.xlu1 %v1421_v40  ;;  %v1557_v15 = vmul.f32 1.442695, %v1487_v57 }
 0x349   :  { %v1551_v9 = vmul.f32 1.442695, %v1484_v45 }
 0x34a   :  { %v1303_v46 = vpop.xlane.xlu1 %1302  ;;  %v1312_v28 = vpop.xlane.xlu0 %1311 }
 0x34b   :  { %4191 = vpow2.f32 %v1551_v9  ;;  %v1485_v52 = vsub.f32 %v5060_v63, %v1303_v46  ;;  %v1488_v18 = vsub.f32 %v5068_v5, %v1312_v28  ;;  %1410 = vmax.xlane.f32.xlu0 %v1409_v42  ;;  %v1427_v28 = vsel %vm1288_vm2, %v5278_v54, -inf }
 0x34c   :  { %1431 = vmax.xlane.f32.xlu1 %v1430_v8  ;;  %4193 = vpow2.f32 %v1557_v15 }
 0x34d   :  { %v1559_v60 = vmul.f32 1.442695, %v1488_v18  ;;  %v1553_v40 = vmul.f32 1.442695, %v1485_v52 }
 0x34e   :  { %v1321_v14 = vpop.xlane.xlu1 %1320  ;;  %v1306_v59 = vpop.xlane.xlu0 %1305 }
 0x34f   :  { %v4186_v45 = vpop.eup %4185  ;;  %v1491_v43 = vsub.f32 %v5056_v62, %v1321_v14  ;;  %v1486_v57 = vsub.f32 %v5072_v13, %v1306_v59  ;;  %1419 = vmax.xlane.f32.xlu0 %v1418_v55  ;;  %4195 = vpow2.f32 %v1559_v60  ;;  %v1424_v55 = vsel %vm1288_vm2, %v5286_v6, -inf }
 0x350   :  { %v4188_v9 = vpop.eup %4187  ;;  %4197 = vpow2.f32 %v1553_v40  ;;  %v1798_v40 = vsel %vm491_vm1, %v5109_v7, 1065369472  ;;  %v1801_v7 = vsel %vm491_vm1, %v5133_v34, 1065369472 }
 0x351   :  { %v1555_v63 = vmul.f32 1.442695, %v1486_v57  ;;  %v1673_v5 = vpack.c.bf16 %v4186_v45, %v4188_v9  ;;  %v1565_v42 = vmul.f32 1.442695, %v1491_v43  ;;  %v4190_v62 = vpop.eup %4189 }
 0x352   :  { %v1315_v46 = vpop.xlane.xlu1 %1314  ;;  %v1324_v8 = vpop.xlane.xlu0 %1323 }
 0x353   :  { %v1489_v18 = vsub.f32 %v5066_v4, %v1315_v46  ;;  %v1492_v15 = vsub.f32 %v5070_v38, %v1324_v8  ;;  %1428 = vmax.xlane.f32.xlu0 %v1427_v28  ;;  %3844 = vmatprep.mubr.msk.bf16.mxu1 %vm1288_vm2, %v1673_v5  ;;  %4199 = vpow2.f32 %v1555_v63 }
 0x354   :  { %4201 = vpow2.f32 %v1565_v42 }
 0x355   :  { %v4192_v13 = vpop.eup %4191  ;;  %v1567_v52 = vmul.f32 1.442695, %v1492_v15  ;;  %v1561_v45 = vmul.f32 1.442695, %v1489_v18 }
 0x356   :  { %v1674_v60 = vpack.c.bf16 %v4192_v13, %v4190_v62  ;;  %v1327_v14 = vpop.xlane.xlu1 %1326  ;;  %v1318_v59 = vpop.xlane.xlu0 %1317 }
 0x357   :  { %v1490_v43 = vsub.f32 %v5076_v16, %v1318_v59  ;;  %1425 = vmax.xlane.f32.xlu0 %v1424_v55  ;;  %4203 = vpow2.f32 %v1567_v52  ;;  %v4194_v4 = vpop.eup %4193  ;;  %v1493_v9 = vsub.f32 %v5088_v31, %v1327_v14  ;;  %v1804_v52 = vsel %vm491_vm1, %v5135_v36, 1065369472 }
 0x358   :  { %3845 = vmatmul.mubr.msk.bf16.vlgmr.msra.gmra.mrb[32].mxu1 %vm1288_vm2, %v1674_v60  ;;  %4205 = vpow2.f32 %v1561_v45 }
 0x359   :  { %v1563_v38 = vmul.f32 1.442695, %v1490_v43  ;;  %3869 = vmatpush3.bf16.msra.mxu1 %v5117_v53  ;;  %v4196_v57 = vpop.eup %4195  ;;  %v1569_v15 = vmul.f32 1.442695, %v1493_v9  ;;  %v1810_v43 = vsel %vm491_vm1, %v5155_v56, 1065369472 }
 0x35a   :  { %3870 = vmatprep.subr.bf16.mxu1 %v1798_v40  ;;  %v1336_v63 = vpop.xlane.xlu1 %1335  ;;  %v1333_v5 = vpop.xlane.xlu0 %1332  ;;  %v1676_v8 = vpack.c.bf16 %v4196_v57, %v4194_v4  ;;  %v1813_v57 = vsel %vm491_vm1, %v5137_v48, 1065369472  ;;  %v5344_v56 = vsel %vm491_vm1, %v5209_v61, 1065369472 }
 0x35b   :  { %v1496_v16 = vsub.f32 %v5094_v41, %v1336_v63  ;;  %v1495_v46 = vsub.f32 %v5086_v30, %v1333_v5  ;;  %4207 = vpow2.f32 %v1563_v38  ;;  %v4198_v28 = vpop.eup %4197 }
 0x35d   :  { %v1575_v42 = vmul.f32 1.442695, %v1496_v16  ;;  %v1573_v18 = vmul.f32 1.442695, %v1495_v46  ;;  %3871 = vmatpush3.bf16.msra.mxu1 %v1798_v40  ;;  %v4200_v53 = vpop.eup %4199 }
 0x35e   :  { %3872 = vmatprep.subr.bf16.mxu1 %v1801_v7  ;;  %v1330_v31 = vpop.xlane.xlu0 %1329  ;;  %v1675_v13 = vpack.c.bf16 %v4200_v53, %v4198_v28  ;;  %v4202_v41 = vpop.eup %4201 }
 0x35f   :  { %4209 = vpow2.f32 %v1575_v42  ;;  %v1494_v62 = vsub.f32 %v5097_v29, %v1330_v31  ;;  %v5328_v29 = vsel %vm491_vm1, %v5175_v23, 1065369472 }
 0x360   :  { %4211 = vpow2.f32 %v1573_v18  ;;  %3848 = vmatprep.mubr.msk.bf16.mxu1 %vm1288_vm2, %v1675_v13 }
 0x361   :  { %v1571_v30 = vmul.f32 1.442695, %v1494_v62  ;;  %3873 = vmatpush3.bf16.msra.mxu1 %v1801_v7  ;;  %v4204_v60 = vpop.eup %4203  ;;  %4213 = vpow2.f32 %v1569_v15 }
 0x362   :  { %3849 = vmatmul.mubr.msk.bf16.gmra.mrb[36].mxu1 %vm1288_vm2, %v1676_v8  ;;  %3874 = vmatprep.subr.bf16.mxu1 %v1804_v52  ;;  %v1678_v34 = vpack.c.bf16 %v4204_v60, %v4202_v41  ;;  %v4206_v14 = vpop.eup %4205 }
 0x363   :  { %4215 = vpow2.f32 %v1571_v30 }
 0x365   :  { %3875 = vmatpush3.bf16.msra.mxu1 %v1804_v52  ;;  %v4208_v59 = vpop.eup %4207 }
 0x366   :  { %3900 = vmatprep.subr.bf16.mxu1 %v5328_v29  ;;  %v1677_v55 = vpack.c.bf16 %v4208_v59, %v4206_v14 }
 0x368   :  { %3860 = vmatprep.mubr.msk.bf16.mxu0 %vm1288_vm2, %v1677_v55 }
 0x369   :  { %v4210_v45 = vpop.eup %4209  ;;  %3861 = vmatmul.mubr.msk.bf16.vlgmr.msra.gmra.mrb[48].mxu0 %vm1288_vm2, %v1678_v34 }
 0x36a   :  { %v4212_v36 = vpop.eup %4211  ;;  %3885 = vmatpush3.bf16.msra.mxu0 %v5128_v19  ;;  %v1816_v19 = vsel %vm491_vm1, %v5239_v49, 1065369472 }
 0x36b   :  { %v1680_v4 = vpack.c.bf16 %v4210_v45, %v4212_v36  ;;  %v4214_v38 = vpop.eup %4213  ;;  %3886 = vmatprep.subr.bf16.mxu0 %v1810_v43 }
 0x36d   :  { %v4216_v23 = vpop.eup %4215 }
 0x36e   :  { %v1679_v40 = vpack.c.bf16 %v4216_v23, %v4214_v38  ;;  %3887 = vmatpush3.bf16.msra.mxu0 %v1810_v43 }
 0x36f   :  { %3888 = vmatprep.subr.bf16.mxu0 %v1813_v57 }
 0x370   :  { %3864 = vmatprep.mubr.msk.bf16.mxu0 %vm1288_vm2, %v1679_v40 }
 0x371   :  { %3865 = vmatmul.mubr.msk.bf16.gmra.mrb[52].mxu0 %vm1288_vm2, %v1680_v4 }
 0x372   :  { %3889 = vmatpush3.bf16.msra.mxu0 %v1813_v57 }
 0x373   :  { %3890 = vmatprep.subr.bf16.mxu0 %v1816_v19 }
 0x376   :  { %3891 = vmatpush3.bf16.msra.mxu0 %v1816_v19 }
 0x377   :  { %3916 = vmatprep.subr.bf16.mxu0 %v5344_v56 }
 0x389   :  { %v5347_v9 = vpop.f32.mrb[24].mxu1 }
 0x38a   :  { %v5349_v48 = vpop.f32.mrb[25].mxu1  ;;  %v1439_v63 = vsel %vm1288_vm2, %v5347_v9, -inf }
 0x38b   :  { %v5353_v5 = vpop.f32.mrb[26].mxu1  ;;  %1440 = vmax.xlane.f32.xlu1 %v1439_v63  ;;  %v1433_v61 = vsel %vm1288_vm2, %v5349_v48, -inf }
 0x38c   :  { %v5355_v16 = vpop.f32.mrb[27].mxu1  ;;  %v1442_v28 = vsel %vm1288_vm2, %v5353_v5, -inf }
 0x38d   :  { %v1436_v49 = vsel %vm1288_vm2, %v5355_v16, -inf }
 0x38e   :  { %1437 = vmax.xlane.f32.xlu0 %v1436_v49 }
 0x38f   :  { %1434 = vmax.xlane.f32.xlu1 %v1433_v61 }
 0x391   :  { %v5361_v46 = vpop.f32.mrb[28].mxu1 }
 0x392   :  { %v5363_v8 = vpop.f32.mrb[29].mxu1  ;;  %v1451_v42 = vsel %vm1288_vm2, %v5361_v46, -inf }
 0x393   :  { %v5369_v18 = vpop.f32.mrb[30].mxu1  ;;  %1443 = vmax.xlane.f32.xlu1 %v1442_v28  ;;  %1452 = vmax.xlane.f32.xlu0 %v1451_v42  ;;  %v1445_v31 = vsel %vm1288_vm2, %v5363_v8, -inf }
 0x394   :  { %v5371_v7 = vpop.f32.mrb[31].mxu1  ;;  %v1454_v62 = vsel %vm1288_vm2, %v5369_v18, -inf }
 0x395   :  { %v5373_v53 = vpop.f32.mrb[40].mxu0  ;;  %v1448_v30 = vsel %vm1288_vm2, %v5371_v7, -inf }
 0x396   :  { %v5375_v15 = vpop.f32.mrb[41].mxu0  ;;  %v1463_v52 = vsel %vm1288_vm2, %v5373_v53, -inf }
 0x397   :  { %1446 = vmax.xlane.f32.xlu1 %v1445_v31  ;;  %1455 = vmax.xlane.f32.xlu0 %v1454_v62  ;;  %v5381_v13 = vpop.f32.mrb[42].mxu0  ;;  %v1457_v59 = vsel %vm1288_vm2, %v5375_v15, -inf }
 0x398   :  { %v5383_v41 = vpop.f32.mrb[43].mxu0  ;;  %v1466_v38 = vsel %vm1288_vm2, %v5381_v13, -inf }
 0x399   :  { %v1460_v55 = vsel %vm1288_vm2, %v5383_v41, -inf }
 0x39b   :  { %1449 = vmax.xlane.f32.xlu0 %v1448_v30  ;;  %1464 = vmax.xlane.f32.xlu1 %v1463_v52 }
 0x39c   :  { %v1345_v60 = vpop.xlane.xlu0 %1344 }
 0x39d   :  { %v5389_v34 = vpop.f32.mrb[44].mxu0  ;;  %v1499_v36 = vsub.f32 %v5141_v0, %v1345_v60 }
 0x39e   :  { %v5391_v14 = vpop.f32.mrb[45].mxu0  ;;  %v1475_v23 = vsel %vm1288_vm2, %v5389_v34, -inf }
 0x39f   :  { %1458 = vmax.xlane.f32.xlu0 %v1457_v59  ;;  %1461 = vmax.xlane.f32.xlu1 %v1460_v55  ;;  %v5397_v45 = vpop.f32.mrb[46].mxu0  ;;  %v1581_v40 = vmul.f32 1.442695, %v1499_v36  ;;  %v1469_v0 = vsel %vm1288_vm2, %v5391_v14, -inf }
 0x3a0   :  { %v5400_v43 = vpop.f32.mrb[47].mxu0  ;;  %v1339_v4 = vpop.xlane.xlu0 %1338 }
 0x3a1   :  { %v1497_v57 = vsub.f32 %v5143_v12, %v1339_v4  ;;  %v1472_v61 = vsel %vm1288_vm2, %v5400_v43, -inf  ;;  %4217 = vpow2.f32 %v1581_v40 }
 0x3a3   :  { %1467 = vmax.xlane.f32.xlu0 %v1466_v38  ;;  %1476 = vmax.xlane.f32.xlu1 %v1475_v23  ;;  %v1577_v42 = vmul.f32 1.442695, %v1497_v57 }
 0x3a4   :  { %v1348_v19 = vpop.xlane.xlu0 %1347 }
 0x3a5   :  { %v1500_v63 = vsub.f32 %v5147_v50, %v1348_v19  ;;  %v1351_v49 = vpop.xlane.xlu1 %1350  ;;  %v1478_v50 = vsel %vm1288_vm2, %v5397_v45, -inf }
 0x3a6   :  { %v1501_v55 = vsub.f32 %v5159_v3, %v1351_v49 }
 0x3a7   :  { %v1583_v28 = vmul.f32 1.442695, %v1500_v63  ;;  %1470 = vmax.xlane.f32.xlu0 %v1469_v0  ;;  %1473 = vmax.xlane.f32.xlu1 %v1472_v61 }
 0x3a8   :  { %v1342_v31 = vpop.xlane.xlu0 %1341  ;;  %v1585_v63 = vmul.f32 1.442695, %v1501_v55 }
 0x3a9   :  { %4219 = vpow2.f32 %v1583_v28  ;;  %v1498_v62 = vsub.f32 %v5149_v51, %v1342_v31  ;;  %v1369_v12 = vpop.xlane.xlu1 %1368 }
 0x3aa   :  { %4221 = vpow2.f32 %v1577_v42  ;;  %v1507_v49 = vsub.f32 %v5171_v20, %v1369_v12 }
 0x3ab   :  { %v1579_v30 = vmul.f32 1.442695, %v1498_v62  ;;  %1479 = vmax.xlane.f32.xlu0 %v1478_v50  ;;  %v4218_v23 = vpop.eup %4217 }
 0x3ac   :  { %v1357_v52 = vpop.xlane.xlu0 %1356 }
 0x3ad   :  { %4223 = vpow2.f32 %v1579_v30  ;;  %v1503_v60 = vsub.f32 %v5157_v2, %v1357_v52  ;;  %v1366_v59 = vpop.xlane.xlu1 %1365  ;;  %v4570_v30 = vmov 8   ;;  %v1597_v52 = vmul.f32 1.442695, %v1507_v49  ;;  %v6069_v49 = vld [vmem:[#allocation24_spill] sm:$0xff] }
 0x3ae   :  { %v1506_v0 = vsub.f32 %v5183_v39, %v1366_v59  ;;  %4183 = vset.pattern.permute.xlu0 %v4570_v30  ;;  %4184 = vset.pattern.permute.xlu1 %v4570_v30 }
 0x3af   :  { %v1589_v36 = vmul.f32 1.442695, %v1503_v60 }
 0x3b0   :  { %v1360_v4 = vpop.xlane.xlu0 %1359 }
 0x3b1   :  { %v1504_v38 = vsub.f32 %v5163_v10, %v1360_v4  ;;  %4225 = vpow2.f32 %v1589_v36  ;;  %v1595_v10 = vmul.f32 1.442695, %v1506_v0  ;;  %v6067_v0 = vld [vmem:[#allocation22_spill] sm:$0xff] }
 0x3b2   :  { %v1375_v57 = vpop.xlane.xlu1 %1374 }
 0x3b3   :  { %v4220_v51 = vpop.eup %4219  ;;  %v1591_v40 = vmul.f32 1.442695, %v1504_v38  ;;  %v1509_v36 = vsub.f32 %v5197_v33, %v1375_v57  ;;  %v1825_v38 = vsel %vm491_vm1, %v5139_v58, 1065369472  ;;  %v6066_v58 = vld [vmem:[#allocation15_spill] sm:$0xff] }
 0x3b4   :  { %v1682_v19 = vpack.c.bf16 %v4220_v51, %v4218_v23  ;;  %v1354_v61 = vpop.xlane.xlu0 %1353  ;;  %v4222_v28 = vpop.eup %4221 }
 0x3b5   :  { %4227 = vpow2.f32 %v1591_v40  ;;  %v1502_v2 = vsub.f32 %v5169_v17, %v1354_v61  ;;  %v1601_v57 = vmul.f32 1.442695, %v1509_v36 }
 0x3b6   :  { %4229 = vpow2.f32 %v1585_v63  ;;  %v1384_v50 = vpop.xlane.xlu1 %1383  ;;  %v1828_v63 = vsel %vm491_vm1, %v6066_v58, 1065369472 }
 0x3b7   :  { %v4224_v42 = vpop.eup %4223  ;;  %v1587_v3 = vmul.f32 1.442695, %v1502_v2  ;;  %v1512_v20 = vsub.f32 %v5201_v37, %v1384_v50  ;;  %v6070_v50 = vld [vmem:[#allocation26_spill] sm:$0xff] }
 0x3b8   :  { %1767 = vrot.lane.b32.xlu1 %v4917_v35, %s4569_s15  ;;  %v1363_v31 = vpop.xlane.xlu0 %1362  ;;  %v1681_v62 = vpack.c.bf16 %v4224_v42, %v4222_v28  ;;  %v1822_v35 = vsel %vm491_vm1, %v5191_v44, 1065369472 }
 0x3b9   :  { %4231 = vpow2.f32 %v1587_v3  ;;  %v1505_v39 = vsub.f32 %v5177_v24, %v1363_v31  ;;  %v1607_v37 = vmul.f32 1.442695, %v1512_v20 }
 0x3ba   :  { %3876 = vmatprep.mubr.msk.bf16.mxu1 %vm1288_vm2, %v1681_v62  ;;  %4233 = vpow2.f32 %v1595_v10 }
 0x3bb   :  { %v1593_v17 = vmul.f32 1.442695, %v1505_v39  ;;  %3877 = vmatmul.mubr.msk.bf16.vlgmr.msra.gmra.mrb[40].mxu1 %vm1288_vm2, %v1682_v19  ;;  %v4226_v59 = vpop.eup %4225  ;;  %v5447_v39 = vsel %vm491_vm1, %v6070_v50, 1065369472 }
 0x3bc   :  { %3901 = vmatpush3.bf16.msra.mxu1 %v5328_v29  ;;  %v1372_v12 = vpop.xlane.xlu0 %1371 }
 0x3bd   :  { %4235 = vpow2.f32 %v1593_v17  ;;  %v1393_v24 = vpop.xlane.xlu1 %1392  ;;  %3902 = vmatprep.subr.bf16.mxu1 %v1822_v35  ;;  %v1508_v60 = vsub.f32 %v5181_v32, %v1372_v12  ;;  %v6071_v12 = vld [vmem:[#allocation25_spill] sm:$0xff] }
 0x3be   :  { %4237 = vpow2.f32 %v1597_v52  ;;  %v1515_v29 = vsub.f32 %v5219_v27, %v1393_v24 }
 0x3bf   :  { %v4228_v55 = vpop.eup %4227  ;;  %v1599_v4 = vmul.f32 1.442695, %v1508_v60 }
 0x3c0   :  { %3903 = vmatpush3.bf16.msra.mxu1 %v1822_v35  ;;  %v1381_v44 = vpop.xlane.xlu0 %1380  ;;  %v1684_v23 = vpack.c.bf16 %v4228_v55, %v4226_v59  ;;  %v4230_v33 = vpop.eup %4229  ;;  %v1613_v27 = vmul.f32 1.442695, %v1515_v29 }
 0x3c1   :  { %4239 = vpow2.f32 %v1599_v4  ;;  %v1387_v51 = vpop.xlane.xlu1 %1386  ;;  %1765 = vrot.lane.b32.xlu0 %v4911_v26, %s4569_s15  ;;  %3904 = vmatprep.subr.bf16.mxu1 %v1825_v38  ;;  %v1511_v32 = vsub.f32 %v5193_v25, %v1381_v44  ;;  %v6068_v26 = vld [vmem:[#allocation19_spill] sm:$0xff] }
 0x3c2   :  { %4241 = vpow2.f32 %v1607_v37  ;;  %v1513_v61 = vsub.f32 %v6067_v0, %v1387_v51 }
 0x3c3   :  { %v4232_v40 = vpop.eup %4231  ;;  %v1605_v19 = vmul.f32 1.442695, %v1511_v32  ;;  %v6073_v32 = vld [vmem:[#allocation27_spill] sm:$0xff] }
 0x3c4   :  { %3905 = vmatpush3.bf16.msra.mxu1 %v1825_v38  ;;  %v1378_v2 = vpop.xlane.xlu0 %1377  ;;  %v1683_v28 = vpack.c.bf16 %v4232_v40, %v4230_v33  ;;  %v4234_v25 = vpop.eup %4233  ;;  %v1609_v30 = vmul.f32 1.442695, %v1513_v61 }
 0x3c5   :  { %4243 = vpow2.f32 %v1605_v19  ;;  %v1396_v42 = vpop.xlane.xlu1 %1395  ;;  %3906 = vmatprep.subr.bf16.mxu1 %v1828_v63  ;;  %v1510_v3 = vsub.f32 %v6068_v26, %v1378_v2  ;;  %v6074_v2 = vld [vmem:[#allocation16_spill] sm:$0xff] }
 0x3c6   :  { %v1516_v10 = vsub.f32 %v6069_v49, %v1396_v42  ;;  %3880 = vmatprep.mubr.msk.bf16.mxu1 %vm1288_vm2, %v1683_v28  ;;  %4245 = vpow2.f32 %v1601_v57  ;;  %v6075_v26 = vld [vmem:[#allocation32_spill] sm:$0xff] }
 0x3c7   :  { %v4236_v31 = vpop.eup %4235  ;;  %v1603_v62 = vmul.f32 1.442695, %v1510_v3  ;;  %3881 = vmatmul.mubr.msk.bf16.gmra.mrb[44].mxu1 %vm1288_vm2, %v1684_v23  ;;  %4247 = vpow2.f32 %v1613_v27  ;;  %v6072_v23 = vld [vmem:[#allocation21_spill] sm:$0xff] }
 0x3c8   :  { %v1615_v17 = vmul.f32 1.442695, %v1516_v10  ;;  %3907 = vmatpush3.bf16.msra.mxu1 %v1828_v63  ;;  %v1390_v52 = vpop.xlane.xlu0 %1389  ;;  %v1685_v20 = vpack.c.bf16 %v4234_v25, %v4236_v31  ;;  %v4238_v60 = vpop.eup %4237  ;;  %v1834_v51 = vsel %vm491_vm1, %v6072_v23, 1065369472  ;;  %v6080_v23 = vld [vmem:[#allocation28_spill] sm:$0xff] }
 0x3c9   :  { %4249 = vpow2.f32 %v1603_v62  ;;  %v1399_v35 = vpop.xlane.xlu1 %1398  ;;  %3932 = vmatprep.subr.bf16.mxu1 %v5447_v39  ;;  %v1514_v24 = vsub.f32 %v6071_v12, %v1390_v52  ;;  %v6076_v62 = vld [vmem:[#allocation29_spill] sm:$0xff]  ;;  %v6077_v52 = vld [vmem:[#allocation31_spill] sm:$0xff] }
 0x3ca   :  { %4251 = vpow2.f32 %v1615_v17  ;;  %3892 = vmatprep.mubr.msk.bf16.mxu0 %vm1288_vm2, %v1685_v20  ;;  %v1517_v33 = vsub.f32 %v6073_v32, %v1399_v35  ;;  %v1840_v20 = vsel %vm491_vm1, %v6077_v52, 1065369472  ;;  %v6078_v35 = vld [vmem:[#allocation30_spill] sm:$0xff] }
 0x3cb   :  { %v4240_v59 = vpop.eup %4239  ;;  %v1611_v55 = vmul.f32 1.442695, %v1514_v24  ;;  %4253 = vpow2.f32 %v1609_v30 }
 0x3cc   :  { %v1686_v36 = vpack.c.bf16 %v4240_v59, %v4238_v60  ;;  %v1405_v4 = vpop.xlane.xlu0 %1404  ;;  %v4242_v29 = vpop.eup %4241  ;;  %v1617_v42 = vmul.f32 1.442695, %v1517_v33 }
 0x3cd   :  { %4255 = vpow2.f32 %v1611_v55  ;;  %v1417_v38 = vpop.xlane.xlu1 %1416  ;;  %v1519_v37 = vsub.f32 %v5241_v1, %v1405_v4 }
 0x3ce   :  { %3893 = vmatmul.mubr.msk.bf16.vlgmr.msra.gmra.mrb[56].mxu0 %vm1288_vm2, %v1686_v36  ;;  %v1523_v12 = vsub.f32 %v6078_v35, %v1417_v38 }
 0x3cf   :  { %v4244_v44 = vpop.eup %4243  ;;  %3917 = vmatpush3.bf16.msra.mxu0 %v5344_v56  ;;  %v1621_v40 = vmul.f32 1.442695, %v1519_v37  ;;  %v1837_v56 = vsel %vm491_vm1, %v6074_v2, 1065369472  ;;  %v6079_v37 = vld [vmem:[#allocation18_spill] sm:$0xff] }
 0x3d0   :  { %3918 = vmatprep.subr.bf16.mxu0 %v1834_v51  ;;  %v1408_v57 = vpop.xlane.xlu0 %1407  ;;  %v1688_v19 = vpack.c.bf16 %v4242_v29, %v4244_v44  ;;  %v4246_v58 = vpop.eup %4245  ;;  %v1855_v29 = vsel %vm491_vm1, %v6079_v37, 1065369472  ;;  %v1629_v38 = vmul.f32 1.442695, %v1523_v12 }
 0x3d1   :  { %v1414_v63 = vpop.xlane.xlu1 %1413  ;;  %v1520_v27 = vsub.f32 %v5249_v21, %v1408_v57  ;;  %v4248_v1 = vpop.eup %4247  ;;  %4257 = vpow2.f32 %v1621_v40 }
 0x3d2   :  { %v1522_v3 = vsub.f32 %v6075_v26, %v1414_v63  ;;  %v6082_v63 = vld [vmem:[#allocation33_spill] sm:$0xff] }
 0x3d3   :  { %v4250_v0 = vpop.eup %4249  ;;  %v1623_v61 = vmul.f32 1.442695, %v1520_v27  ;;  %3919 = vmatpush3.bf16.msra.mxu0 %v1834_v51  ;;  %v1846_v51 = vsel %vm491_vm1, %v6080_v23, 1065369472 }
 0x3d4   :  { %v4252_v28 = vpop.eup %4251  ;;  %3920 = vmatprep.subr.bf16.mxu0 %v1837_v56  ;;  %v1402_v25 = vpop.xlane.xlu0 %1401  ;;  %v1687_v49 = vpack.c.bf16 %v4250_v0, %v4246_v58  ;;  %v1627_v24 = vmul.f32 1.442695, %v1522_v3 }
 0x3d5   :  { %v1690_v10 = vpack.c.bf16 %v4252_v28, %v4248_v1  ;;  %4259 = vpow2.f32 %v1623_v61  ;;  %v1423_v31 = vpop.xlane.xlu1 %1422  ;;  %v1518_v21 = vsub.f32 %v6076_v62, %v1402_v25  ;;  %v4254_v50 = vpop.eup %4253  ;;  %v6083_v28 = vld [vmem:[#allocation20_spill] sm:$0xff] }
 0x3d6   :  { %3896 = vmatprep.mubr.msk.bf16.mxu0 %vm1288_vm2, %v1687_v49  ;;  %4261 = vpow2.f32 %v1617_v42  ;;  %v1852_v42 = vsel %vm491_vm1, %v6083_v28, 1065369472 }
 0x3d7   :  { %v4256_v30 = vpop.eup %4255  ;;  %v1619_v17 = vmul.f32 1.442695, %v1518_v21  ;;  %3921 = vmatpush3.bf16.msra.mxu0 %v1837_v56 }
 0x3d8   :  { %3897 = vmatmul.mubr.msk.bf16.gmra.mrb[60].mxu0 %vm1288_vm2, %v1688_v19  ;;  %3922 = vmatprep.subr.bf16.mxu0 %v1840_v20  ;;  %v1411_v60 = vpop.xlane.xlu0 %1410  ;;  %v1689_v59 = vpack.c.bf16 %v4256_v30, %v4254_v50  ;;  %v6081_v19 = vld [vmem:[#allocation17_spill] sm:$0xff] }
 0x3d9   :  { %4263 = vpow2.f32 %v1619_v17  ;;  %v1432_v55 = vpop.xlane.xlu1 %1431  ;;  %v1521_v36 = vsub.f32 %v5263_v22, %v1411_v60  ;;  %v1849_v58 = vsel %vm491_vm1, %v6081_v19, 1065369472  ;;  %v6084_v17 = vld [vmem:[#allocation23_spill] sm:$0xff] }
 0x3da   :  { %3908 = vmatprep.mubr.msk.bf16.mxu1 %vm1288_vm2, %v1689_v59  ;;  %4265 = vpow2.f32 %v1627_v24  ;;  %v1528_v44 = vsub.f32 %v5284_v47, %v1432_v55  ;;  %v1525_v47 = vsub.f32 %v6082_v63, %v1423_v31  ;;  %v1858_v52 = vsel %vm491_vm1, %v6084_v17, 1065369472 }
 0x3db   :  { %v1625_v4 = vmul.f32 1.442695, %v1521_v36  ;;  %3923 = vmatpush3.bf16.msra.mxu0 %v1840_v20  ;;  %3909 = vmatmul.mubr.msk.bf16.vlgmr.msra.gmra.mrb[48].mxu1 %vm1288_vm2, %v1690_v10  ;;  %v4258_v33 = vpop.eup %4257 }
 0x3dc   :  { %3933 = vmatpush3.bf16.msra.mxu1 %v5447_v39  ;;  %3948 = vmatprep.subr.bf16.mxu0 %v1855_v29  ;;  %v1420_v22 = vpop.xlane.xlu0 %1419  ;;  %v1639_v27 = vmul.f32 1.442695, %v1528_v44  ;;  %v1633_v56 = vmul.f32 1.442695, %v1525_v47 }
 0x3dd   :  { %4267 = vpow2.f32 %v1625_v4  ;;  %3934 = vmatprep.subr.bf16.mxu1 %v1846_v51  ;;  %v1524_v32 = vsub.f32 %v5265_v11, %v1420_v22 }
 0x3de   :  { %4269 = vpow2.f32 %v1629_v38 }
 0x3df   :  { %v4260_v40 = vpop.eup %4259  ;;  %v1631_v57 = vmul.f32 1.442695, %v1524_v32 }
 0x3e0   :  { %3935 = vmatpush3.bf16.msra.mxu1 %v1846_v51  ;;  %v1429_v39 = vpop.xlane.xlu0 %1428  ;;  %v1692_v1 = vpack.c.bf16 %v4260_v40, %v4258_v33  ;;  %v4262_v61 = vpop.eup %4261 }
 0x3e1   :  { %4271 = vpow2.f32 %v1631_v57  ;;  %3936 = vmatprep.subr.bf16.mxu1 %v1849_v58  ;;  %v1527_v0 = vsub.f32 %v5278_v54, %v1429_v39 }
 0x3e2   :  { %4273 = vpow2.f32 %v1639_v27 }
 0x3e3   :  { %v4264_v2 = vpop.eup %4263  ;;  %v1637_v11 = vmul.f32 1.442695, %v1527_v0 }
 0x3e4   :  { %3937 = vmatpush3.bf16.msra.mxu1 %v1849_v58  ;;  %v1426_v26 = vpop.xlane.xlu0 %1425  ;;  %v1691_v3 = vpack.c.bf16 %v4264_v2, %v4262_v61  ;;  %v4266_v49 = vpop.eup %4265 }
 0x3e5   :  { %4275 = vpow2.f32 %v1637_v11  ;;  %3938 = vmatprep.subr.bf16.mxu1 %v1852_v42  ;;  %v1526_v25 = vsub.f32 %v5286_v6, %v1426_v26 }
 0x3e6   :  { %3912 = vmatprep.mubr.msk.bf16.mxu1 %vm1288_vm2, %v1691_v3  ;;  %4277 = vpow2.f32 %v1633_v56 }
 0x3e7   :  { %v4268_v10 = vpop.eup %4267  ;;  %v1635_v54 = vmul.f32 1.442695, %v1526_v25  ;;  %3913 = vmatmul.mubr.msk.bf16.gmra.mrb[52].mxu1 %vm1288_vm2, %v1692_v1 }
 0x3e8   :  { %3939 = vmatpush3.bf16.msra.mxu1 %v1852_v42  ;;  %v1693_v31 = vpack.c.bf16 %v4266_v49, %v4268_v10  ;;  %v4270_v62 = vpop.eup %4269 }
 0x3e9   :  { %4279 = vpow2.f32 %v1635_v54 }
 0x3ea   :  { %3924 = vmatprep.mubr.msk.bf16.mxu0 %vm1288_vm2, %v1693_v31 }
 0x3eb   :  { %v4272_v21 = vpop.eup %4271 }
 0x3ec   :  { %v1694_v50 = vpack.c.bf16 %v4272_v21, %v4270_v62  ;;  %v4274_v30 = vpop.eup %4273 }
 0x3ee   :  { %3925 = vmatmul.mubr.msk.bf16.vlgmr.msra.gmra.mrb[64].mxu0 %vm1288_vm2, %v1694_v50 }
 0x3ef   :  { %v4276_v6 = vpop.eup %4275  ;;  %3949 = vmatpush3.bf16.msra.mxu0 %v1855_v29 }
 0x3f0   :  { %3950 = vmatprep.subr.bf16.mxu0 %v1858_v52  ;;  %v1696_v20 = vpack.c.bf16 %v4274_v30, %v4276_v6  ;;  %v4278_v35 = vpop.eup %4277 }
 0x3f3   :  { %v4280_v12 = vpop.eup %4279  ;;  %3951 = vmatpush3.bf16.msra.mxu0 %v1858_v52 }
 0x3f4   :  { %v1695_v24 = vpack.c.bf16 %v4280_v12, %v4278_v35 }
 0x3f6   :  { %3928 = vmatprep.mubr.msk.bf16.mxu0 %vm1288_vm2, %v1695_v24 }
 0x3f7   :  { %3929 = vmatmul.mubr.msk.bf16.gmra.mrb[68].mxu0 %vm1288_vm2, %v1696_v20 }
 0x418   :  { %v1441_v60 = vpop.xlane.xlu1 %1440 }
 0x419   :  { %v1531_v55 = vsub.f32 %v5347_v9, %v1441_v60 }
 0x41b   :  { %v1438_v59 = vpop.xlane.xlu0 %1437  ;;  %v1645_v44 = vmul.f32 1.442695, %v1531_v55 }
 0x41c   :  { %v1530_v36 = vsub.f32 %v5355_v16, %v1438_v59  ;;  %v1435_v4 = vpop.xlane.xlu1 %1434 }
 0x41d   :  { %v1529_v37 = vsub.f32 %v5349_v48, %v1435_v4 }
 0x41e   :  { %v1643_v29 = vmul.f32 1.442695, %v1530_v36 }
 0x41f   :  { %v1641_v38 = vmul.f32 1.442695, %v1529_v37 }
 0x420   :  { %4281 = vpow2.f32 %v1643_v29  ;;  %v1444_v23 = vpop.xlane.xlu1 %1443  ;;  %v1453_v51 = vpop.xlane.xlu0 %1452 }
 0x421   :  { %4283 = vpow2.f32 %v1641_v38  ;;  %v1532_v22 = vsub.f32 %v5353_v5, %v1444_v23  ;;  %v1535_v32 = vsub.f32 %v5361_v46, %v1453_v51 }
 0x422   :  { %4285 = vpow2.f32 %v1645_v44 }
 0x423   :  { %v1647_v33 = vmul.f32 1.442695, %v1532_v22  ;;  %v1653_v16 = vmul.f32 1.442695, %v1535_v32 }
 0x424   :  { %v1447_v40 = vpop.xlane.xlu1 %1446  ;;  %v1456_v9 = vpop.xlane.xlu0 %1455 }
 0x425   :  { %4287 = vpow2.f32 %v1647_v33  ;;  %v1533_v57 = vsub.f32 %v5363_v8, %v1447_v40  ;;  %v1536_v48 = vsub.f32 %v5369_v18, %v1456_v9 }
 0x426   :  { %4289 = vpow2.f32 %v1653_v16 }
 0x427   :  { %v1655_v19 = vmul.f32 1.442695, %v1536_v48  ;;  %v1649_v47 = vmul.f32 1.442695, %v1533_v57 }
 0x428   :  { %v1465_v58 = vpop.xlane.xlu1 %1464  ;;  %v1450_v63 = vpop.xlane.xlu0 %1449 }
 0x429   :  { %v1534_v27 = vsub.f32 %v5371_v7, %v1450_v63  ;;  %4291 = vpow2.f32 %v1655_v19  ;;  %v1539_v0 = vsub.f32 %v5373_v53, %v1465_v58 }
 0x42a   :  { %v4282_v5 = vpop.eup %4281 }
 0x42b   :  { %v4284_v46 = vpop.eup %4283  ;;  %v1651_v39 = vmul.f32 1.442695, %v1534_v27  ;;  %v5501_v1 = vpop.f32.mrb[32].mxu1  ;;  %v1661_v25 = vmul.f32 1.442695, %v1539_v0 }
 0x42c   :  { %4293 = vrcp.f32 %v5501_v1  ;;  %v1462_v8 = vpop.xlane.xlu1 %1461  ;;  %v5505_v61 = vpop.f32.mrb[33].mxu1  ;;  %v1697_v18 = vpack.c.bf16 %v4282_v5, %v4284_v46 }
 0x42d   :  { %6085 = vst [vmem:[#allocation15_spill] sm:$0xff] %v5505_v61  ;;  %4295 = vpow2.f32 %v1649_v47  ;;  %v1538_v2 = vsub.f32 %v5383_v41, %v1462_v8  ;;  %v1459_v11 = vpop.xlane.xlu0 %1458  ;;  %v5508_v56 = vpop.f32.mrb[34].mxu1 }
 0x42e   :  { %6086 = vst [vmem:[#allocation22_spill] sm:$0xff] %v5508_v56  ;;  %v4286_v7 = vpop.eup %4285  ;;  %4297 = vpow2.f32 %v1651_v39  ;;  %v1537_v28 = vsub.f32 %v5375_v15, %v1459_v11  ;;  %v5511_v42 = vpop.f32.mrb[35].mxu1  ;;  %3940 = vmatprep.mubr.msk.bf16.mxu1 %vm1288_vm2, %v1697_v18 }
 0x42f   :  { %6087 = vst [vmem:[#allocation19_spill] sm:$0xff] %v5511_v42  ;;  %v4288_v53 = vpop.eup %4287  ;;  %v1659_v26 = vmul.f32 1.442695, %v1538_v2  ;;  %4299 = vrcp.f32 %v5505_v61 }
 0x430   :  { %v1698_v3 = vpack.c.bf16 %v4288_v53, %v4286_v7  ;;  %v1657_v49 = vmul.f32 1.442695, %v1537_v28  ;;  %v1477_v10 = vpop.xlane.xlu1 %1476  ;;  %v4290_v15 = vpop.eup %4289 }
 0x431   :  { %4301 = vpow2.f32 %v1659_v26  ;;  %v1543_v41 = vsub.f32 %v5389_v34, %v1477_v10  ;;  %v1468_v54 = vpop.xlane.xlu0 %1467 }
 0x432   :  { %4303 = vpow2.f32 %v1657_v49  ;;  %v1540_v31 = vsub.f32 %v5381_v13, %v1468_v54  ;;  %3941 = vmatmul.mubr.msk.bf16.vlgmr.msra.gmra.mrb[56].mxu1 %vm1288_vm2, %v1698_v3 }
 0x433   :  { %4305 = vrcp.f32 %v5508_v56  ;;  %v1669_v62 = vmul.f32 1.442695, %v1543_v41  ;;  %v4292_v21 = vpop.eup %4291 }
 0x434   :  { %4307 = vpow2.f32 %v1661_v25  ;;  %v1663_v50 = vmul.f32 1.442695, %v1540_v31  ;;  %v1474_v30 = vpop.xlane.xlu1 %1473  ;;  %v1700_v52 = vpack.c.bf16 %v4292_v21, %v4290_v15 }
 0x435   :  { %4309 = vrcp.f32 %v5511_v42  ;;  %v1542_v6 = vsub.f32 %v5400_v43, %v1474_v30  ;;  %v5521_v17 = vpop.f32.mrb[36].mxu1  ;;  %v1471_v34 = vpop.xlane.xlu0 %1470 }
 0x436   :  { %6088 = vst [vmem:[#allocation24_spill] sm:$0xff] %v5521_v17  ;;  %v4294_v20 = vpop.eup %4293  ;;  %4311 = vpow2.f32 %v1663_v50  ;;  %v1541_v13 = vsub.f32 %v5391_v14, %v1471_v34  ;;  %v5524_v35 = vpop.f32.mrb[37].mxu1 }
 0x437   :  { %6089 = vst [vmem:[#allocation26_spill] sm:$0xff] %v5524_v35  ;;  %v4296_v12 = vpop.eup %4295  ;;  %4313 = vpow2.f32 %v1669_v62  ;;  %v1667_v24 = vmul.f32 1.442695, %v1542_v6  ;;  %v5526_v60 = vpop.f32.mrb[38].mxu1  ;;  %2558 = vperm.xlu0 %4183, %v4294_v20  }
 0x438   :  { %6090 = vst [vmem:[#allocation25_spill] sm:$0xff] %v5526_v60  ;;  %v4298_v59 = vpop.eup %4297  ;;  %v1665_v55 = vmul.f32 1.442695, %v1541_v13  ;;  %4315 = vrcp.f32 %v5524_v35  ;;  %v5529_v43 = vpop.f32.mrb[39].mxu1 }
 0x439   :  { %6091 = vst [vmem:[#allocation21_spill] sm:$0xff] %v5529_v43  ;;  %v4300_v36 = vpop.eup %4299  ;;  %4317 = vpow2.f32 %v1667_v24  ;;  %v1480_v4 = vpop.xlane.xlu0 %1479  ;;  %v1699_v37 = vpack.c.bf16 %v4298_v59, %v4296_v12 }
 0x43a   :  { %4319 = vpow2.f32 %v1665_v55  ;;  %2548 = vperm.xlu1 %4184, %v4300_v36   ;;  %v1544_v14 = vsub.f32 %v5397_v45, %v1480_v4  ;;  %v1768_v44 = vpop.permute.xlu1 %1767 }
 0x43b   :  { %v4302_v29 = vpop.eup %4301  ;;  %4321 = vrcp.f32 %v5521_v17  ;;  %3944 = vmatprep.mubr.msk.bf16.mxu1 %vm1288_vm2, %v1699_v37  ;;  %v1864_v58 = vsel %vm491_vm1, %v1768_v44, 1065369472 }
 0x43c   :  { %v4304_v38 = vpop.eup %4303  ;;  %4323 = vrcp.f32 %v5526_v60  ;;  %v1671_v23 = vmul.f32 1.442695, %v1544_v14  ;;  %3945 = vmatmul.mubr.msk.bf16.gmra.mrb[60].mxu1 %vm1288_vm2, %v1700_v52  ;;  %v5537_v22 = vpop.f32.mrb[48].mxu0 }
 0x43d   :  { %v4306_v51 = vpop.eup %4305  ;;  %4325 = vrcp.f32 %v5529_v43  ;;  %6092 = vst [vmem:[#allocation27_spill] sm:$0xff] %v5537_v22  ;;  %v1766_v32 = vpop.permute.xlu0 %1765  ;;  %v1701_v33 = vpack.c.bf16 %v4302_v29, %v4304_v38 }
 0x43e   :  { %v4308_v45 = vpop.eup %4307  ;;  %4327 = vpow2.f32 %v1671_v23  ;;  %2563 = vperm.xlu1 %4184, %v4306_v51   ;;  %v5539_v40 = vpop.f32.mrb[49].mxu0  ;;  %v1861_v9 = vsel %vm491_vm1, %v1766_v32, 1065369472 }
 0x43f   :  { %6093 = vst [vmem:[#allocation16_spill] sm:$0xff] %v5539_v40  ;;  %v4310_v16 = vpop.eup %4309  ;;  %4329 = vrcp.f32 %v5537_v22  ;;  %v5543_v57 = vpop.f32.mrb[50].mxu0  ;;  %3952 = vmatprep.subr.bf16.mxu0 %v1861_v9  ;;  %3956 = vmatprep.mubr.msk.bf16.mxu0 %vm1288_vm2, %v1701_v33 }
 0x440   :  { %6094 = vst [vmem:[#allocation32_spill] sm:$0xff] %v5543_v57  ;;  %v4312_v48 = vpop.eup %4311  ;;  %v5546_v19 = vpop.f32.mrb[51].mxu0  ;;  %3953 = vmatpush3.bf16.msra.mxu0 %v1861_v9  ;;  %4331 = vrcp.f32 %v5539_v40 }
 0x441   :  { %v4314_v63 = vpop.eup %4313  ;;  %v1702_v47 = vpack.c.bf16 %v4312_v48, %v4308_v45  ;;  %3954 = vmatprep.subr.bf16.mxu0 %v1864_v58  ;;  %4333 = vrcp.f32 %v5543_v57 }
 0x442   :  { %v4316_v27 = vpop.eup %4315  ;;  %2553 = vperm.xlu1 %4184, %v4310_v16  }
 0x443   :  { %v4318_v5 = vpop.eup %4317  ;;  %2568 = vperm.xlu0 %4183, %v4316_v27  }
 0x444   :  { %v4320_v46 = vpop.eup %4319  ;;  %3955 = vmatpush3.bf16.msra.mxu0 %v1864_v58  ;;  %v5551_v0 = vpop.f32.mrb[52].mxu0 }
 0x445   :  { %v4322_v39 = vpop.eup %4321  ;;  %6095 = vst [vmem:[#allocation29_spill] sm:$0xff] %v5551_v0  ;;  %v1703_v8 = vpack.c.bf16 %v4318_v5, %v4320_v46  ;;  %4335 = vrcp.f32 %v5551_v0  ;;  %v5554_v2 = vpop.f32.mrb[53].mxu0 }
 0x446   :  { %v4324_v18 = vpop.eup %4323  ;;  %2578 = vperm.xlu1 %4184, %v4322_v39   ;;  %6096 = vst [vmem:[#allocation31_spill] sm:$0xff] %v5554_v2  ;;  %v5556_v7 = vpop.f32.mrb[54].mxu0  ;;  %4337 = vrcp.f32 %v5546_v19 }
 0x447   :  { %v4326_v11 = vpop.eup %4325  ;;  %2583 = vperm.xlu0 %4183, %v4324_v18   ;;  %3957 = vmatmul.mubr.msk.bf16.vlgmr.msra.gmra.mrb[72].mxu0 %vm1288_vm2, %v1702_v47  ;;  %v5560_v53 = vpop.f32.mrb[55].mxu0  ;;  %4339 = vrcp.f32 %v5554_v2 }
 0x448   :  { %v4328_v28 = vpop.eup %4327  ;;  %6097 = vst [vmem:[#allocation30_spill] sm:$0xff] %v5560_v53  ;;  %3960 = vmatprep.mubr.msk.bf16.mxu0 %vm1288_vm2, %v1703_v8  ;;  %4341 = vrcp.f32 %v5556_v7 }
 0x449   :  { %v4330_v26 = vpop.eup %4329  ;;  %v1704_v3 = vpack.c.bf16 %v4328_v28, %v4314_v63  ;;  %4343 = vrcp.f32 %v5560_v53 }
 0x44a   :  { %2573 = vperm.xlu1 %4184, %v4326_v11   ;;  %v4332_v25 = vpop.eup %4331 }
 0x44b   :  { %2598 = vperm.xlu0 %4183, %v4330_v26   ;;  %v4334_v49 = vpop.eup %4333 }
 0x44e   :  { %2588 = vperm.xlu1 %4184, %v4332_v25  }
 0x44f   :  { %2603 = vperm.xlu0 %4183, %v4334_v49   ;;  %3961 = vmatmul.mubr.msk.bf16.gmra.mrb[76].mxu0 %vm1288_vm2, %v1704_v3  ;;  %v4336_v10 = vpop.eup %4335 }
 0x450   :  { %v4338_v41 = vpop.eup %4337 }
 0x451   :  { %v4340_v54 = vpop.eup %4339 }
 0x452   :  { %2618 = vperm.xlu1 %4184, %v4336_v10   ;;  %v4342_v31 = vpop.eup %4341 }
 0x453   :  { %2593 = vperm.xlu0 %4183, %v4338_v41   ;;  %v4344_v15 = vpop.eup %4343 }
 0x456   :  { %2608 = vperm.xlu1 %4184, %v4340_v54  }
 0x457   :  { %2623 = vperm.xlu0 %4183, %v4342_v31  }
 0x45b   :  { %2613 = vperm.xlu0 %4183, %v4344_v15  }
 0x48e   :  { %v5567_v62 = vpop.f32.mrb[40].mxu1 }
 0x48f   :  { %4345 = vrcp.f32 %v5567_v62  ;;  %v5570_v21 = vpop.f32.mrb[41].mxu1 }
 0x490   :  { %v5572_v50 = vpop.f32.mrb[42].mxu1  ;;  %4347 = vrcp.f32 %v5570_v21 }
 0x491   :  { %v5574_v30 = vpop.f32.mrb[43].mxu1  ;;  %4349 = vrcp.f32 %v5572_v50 }
 0x492   :  { %4351 = vrcp.f32 %v5574_v30 }
 0x499   :  { %v4346_v6 = vpop.eup %4345 }
 0x49a   :  { %2638 = vperm.xlu1 %4184, %v4346_v6   ;;  %v5578_v34 = vpop.f32.mrb[44].mxu1  ;;  %v4348_v13 = vpop.eup %4347 }
 0x49b   :  { %v5581_v52 = vpop.f32.mrb[45].mxu1  ;;  %4353 = vrcp.f32 %v5578_v34  ;;  %v4350_v24 = vpop.eup %4349 }
 0x49c   :  { %v5583_v20 = vpop.f32.mrb[46].mxu1  ;;  %v4352_v37 = vpop.eup %4351 }
 0x49d   :  { %v5585_v12 = vpop.f32.mrb[47].mxu1 }
 0x49e   :  { %2628 = vperm.xlu1 %4184, %v4348_v13  }
 0x4a1   :  { %v5588_v59 = vpop.f32.mrb[56].mxu0 }
 0x4a2   :  { %4355 = vrcp.f32 %v5588_v59  ;;  %2643 = vperm.xlu1 %4184, %v4350_v24   ;;  %v5591_v55 = vpop.f32.mrb[57].mxu0 }
 0x4a3   :  { %4357 = vrcp.f32 %v5581_v52  ;;  %v5594_v36 = vpop.f32.mrb[58].mxu0 }
 0x4a4   :  { %v5596_v4 = vpop.f32.mrb[59].mxu0  ;;  %4359 = vrcp.f32 %v5594_v36 }
 0x4a5   :  { %4361 = vrcp.f32 %v5583_v20  ;;  %v4354_v14 = vpop.eup %4353 }
 0x4a6   :  { %2633 = vperm.xlu1 %4184, %v4352_v37   ;;  %4363 = vrcp.f32 %v5596_v4 }
 0x4a7   :  { %4365 = vrcp.f32 %v5585_v12 }
 0x4aa   :  { %2658 = vperm.xlu1 %4184, %v4354_v14  }
 0x4ab   :  { %v5602_v29 = vpop.f32.mrb[60].mxu0 }
 0x4ac   :  { %v4356_v38 = vpop.eup %4355  ;;  %v5604_v44 = vpop.f32.mrb[61].mxu0  ;;  %4367 = vrcp.f32 %v5602_v29 }
 0x4ad   :  { %v4358_v23 = vpop.eup %4357  ;;  %v5606_v51 = vpop.f32.mrb[62].mxu0  ;;  %2678 = vperm.xlu0 %4183, %v4356_v38   ;;  %4369 = vrcp.f32 %v5591_v55 }
 0x4ae   :  { %v5609_v32 = vpop.f32.mrb[63].mxu0  ;;  %2648 = vperm.xlu1 %4184, %v4358_v23   ;;  %v5611_v33 = vpop.f32.mrb[48].mxu1  ;;  %4371 = vrcp.f32 %v5604_v44 }
 0x4af   :  { %v5614_v45 = vpop.f32.mrb[49].mxu1  ;;  %v4360_v9 = vpop.eup %4359  ;;  %4373 = vrcp.f32 %v5611_v33 }
 0x4b0   :  { %v5616_v16 = vpop.f32.mrb[50].mxu1  ;;  %v4362_v48 = vpop.eup %4361  ;;  %4375 = vrcp.f32 %v5606_v51 }
 0x4b1   :  { %2683 = vperm.xlu0 %4183, %v4360_v9   ;;  %v5618_v58 = vpop.f32.mrb[51].mxu1  ;;  %v4364_v63 = vpop.eup %4363  ;;  %4377 = vrcp.f32 %v5614_v45 }
 0x4b2   :  { %2663 = vperm.xlu1 %4184, %v4362_v48   ;;  %v4366_v47 = vpop.eup %4365  ;;  %4379 = vrcp.f32 %v5609_v32 }
 0x4b3   :  { %4381 = vrcp.f32 %v5616_v16 }
 0x4b4   :  { %4383 = vrcp.f32 %v5618_v58 }
 0x4b5   :  { %2673 = vperm.xlu0 %4183, %v4364_v63  }
 0x4b6   :  { %2653 = vperm.xlu1 %4184, %v4366_v47   ;;  %v4368_v27 = vpop.eup %4367  ;;  %v5634_v26 = vpop.permute.xlu0 %2558 }
 0x4b7   :  { %v4370_v5 = vpop.eup %4369 }
 0x4b8   :  { %v4372_v8 = vpop.eup %4371 }
 0x4b9   :  { %2698 = vperm.xlu0 %4183, %v4368_v27   ;;  %v4374_v11 = vpop.eup %4373 }
 0x4ba   :  { %2668 = vperm.xlu1 %4184, %v4370_v5   ;;  %v5625_v46 = vpop.f32.mrb[52].mxu1  ;;  %v4376_v3 = vpop.eup %4375 }
 0x4bb   :  { %v5628_v39 = vpop.f32.mrb[53].mxu1  ;;  %v4378_v25 = vpop.eup %4377 }
 0x4bc   :  { %v5630_v18 = vpop.f32.mrb[54].mxu1  ;;  %v4380_v31 = vpop.eup %4379 }
 0x4bd   :  { %2688 = vperm.xlu0 %4183, %v4372_v8   ;;  %v5632_v28 = vpop.f32.mrb[55].mxu1  ;;  %v4382_v6 = vpop.eup %4381 }
 0x4be   :  { %2718 = vperm.xlu1 %4184, %v4374_v11   ;;  %v4384_v24 = vpop.eup %4383 }
 0x4c1   :  { %2703 = vperm.xlu0 %4183, %v4376_v3   ;;  %v5637_v49 = vpop.f32.mrb[64].mxu0 }
 0x4c2   :  { %v5639_v10 = vpop.permute.xlu0 %2568  ;;  %4385 = vrcp.f32 %v5637_v49  ;;  %2708 = vperm.xlu1 %4184, %v4378_v25   ;;  %v5642_v41 = vpop.f32.mrb[65].mxu0 }
 0x4c3   :  { %6098 = vst [vmem:[#allocation18_spill] sm:$0xff] %v5639_v10  ;;  %4387 = vrcp.f32 %v5625_v46  ;;  %v5645_v54 = vpop.f32.mrb[66].mxu0 }
 0x4c4   :  { %v5647_v15 = vpop.f32.mrb[67].mxu0  ;;  %4389 = vrcp.f32 %v5645_v54 }
 0x4c5   :  { %2693 = vperm.xlu0 %4183, %v4380_v31   ;;  %4391 = vrcp.f32 %v5628_v39 }
 0x4c6   :  { %v5650_v13 = vpop.permute.xlu0 %2583  ;;  %2723 = vperm.xlu1 %4184, %v4382_v6   ;;  %4393 = vrcp.f32 %v5647_v15 }
 0x4c7   :  { %6099 = vst [vmem:[#allocation28_spill] sm:$0xff] %v5650_v13  ;;  %4395 = vrcp.f32 %v5630_v18 }
 0x4ca   :  { %v5654_v37 = vpop.permute.xlu0 %2598  ;;  %2713 = vperm.xlu1 %4184, %v4384_v24   ;;  %v5656_v14 = vpop.f32.mrb[68].mxu0 }
 0x4cb   :  { %6100 = vst [vmem:[#allocation17_spill] sm:$0xff] %v5654_v37  ;;  %v5659_v38 = vpop.f32.mrb[69].mxu0  ;;  %4397 = vrcp.f32 %v5656_v14 }
 0x4cc   :  { %v4386_v23 = vpop.eup %4385  ;;  %v5661_v9 = vpop.f32.mrb[70].mxu0  ;;  %4399 = vrcp.f32 %v5632_v28 }
 0x4cd   :  { %v4388_v48 = vpop.eup %4387  ;;  %2758 = vperm.xlu0 %4183, %v4386_v23   ;;  %v5663_v63 = vpop.f32.mrb[71].mxu0  ;;  %4401 = vrcp.f32 %v5659_v38 }
 0x4ce   :  { %v5666_v47 = vpop.permute.xlu0 %2603  ;;  %2738 = vperm.xlu1 %4184, %v4388_v48   ;;  %v4390_v27 = vpop.eup %4389  ;;  %4403 = vrcp.f32 %v5642_v41 }
 0x4cf   :  { %6101 = vst [vmem:[#allocation33_spill] sm:$0xff] %v5666_v47  ;;  %v4392_v5 = vpop.eup %4391  ;;  %4405 = vrcp.f32 %v5661_v9 }
 0x4d0   :  { %v4394_v3 = vpop.eup %4393  ;;  %4407 = vrcp.f32 %v5663_v63 }
 0x4d1   :  { %2763 = vperm.xlu0 %4183, %v4390_v27   ;;  %v4396_v25 = vpop.eup %4395 }
 0x4d2   :  { %v2594_v8 = vpop.permute.xlu0 %2593  ;;  %2728 = vperm.xlu1 %4184, %v4392_v5  }
 0x4d3   :  { %v5672_v11 = vmul.f32 %v2594_v8, %v5546_v19  ;;  %v5679_v8 = vpop.permute.xlu1 %2548 }
 0x4d4   :  { %6104 = vst [vmem:[#allocation34_spill] sm:$0xff] %v5679_v8 }
 0x4d5   :  { %6102 = vst [vmem:[#allocation20_spill] sm:$0xff] %v5672_v11  ;;  %2753 = vperm.xlu0 %4183, %v4394_v3   ;;  %v4398_v24 = vpop.eup %4397 }
 0x4d6   :  { %v2624_v31 = vpop.permute.xlu0 %2623  ;;  %2743 = vperm.xlu1 %4184, %v4396_v25   ;;  %v4400_v23 = vpop.eup %4399 }
 0x4d7   :  { %v5676_v6 = vmul.f32 %v5556_v7, %v2624_v31  ;;  %v4402_v48 = vpop.eup %4401  ;;  %v5681_v3 = vpop.permute.xlu1 %2563 }
 0x4d8   :  { %v4404_v27 = vpop.eup %4403  ;;  %6105 = vst [vmem:[#allocation35_spill] sm:$0xff] %v5681_v3 }
 0x4d9   :  { %6103 = vst [vmem:[#allocation23_spill] sm:$0xff] %v5676_v6  ;;  %2778 = vperm.xlu0 %4183, %v4398_v24   ;;  %v4406_v19 = vpop.eup %4405 }
 0x4da   :  { %2733 = vperm.xlu1 %4184, %v4400_v23   ;;  %v4408_v5 = vpop.eup %4407  ;;  %v5740_v47 = vpop.permute.xlu0 %2613 }
 0x4db   :  { %v5683_v7 = vpop.permute.xlu1 %2553  ;;  %6115 = vst [vmem:[#allocation45_spill] sm:$0xff] %v5740_v47 }
 0x4dc   :  { %6106 = vst [vmem:[#allocation36_spill] sm:$0xff] %v5683_v7 }
 0x4dd   :  { %2768 = vperm.xlu0 %4183, %v4402_v48  }
 0x4de   :  { %2748 = vperm.xlu1 %4184, %v4404_v27  }
 0x4df   :  { %v5685_v25 = vpop.permute.xlu1 %2578 }
 0x4e0   :  { %6107 = vst [vmem:[#allocation37_spill] sm:$0xff] %v5685_v25 }
 0x4e1   :  { %2783 = vperm.xlu0 %4183, %v4406_v19  }
 0x4e3   :  { %v5687_v31 = vpop.permute.xlu1 %2573 }
 0x4e4   :  { %6108 = vst [vmem:[#allocation38_spill] sm:$0xff] %v5687_v31 }
 0x4e5   :  { %2773 = vperm.xlu0 %4183, %v4408_v5  }
 0x4e7   :  { %v5698_v19 = vpop.permute.xlu1 %2588 }
 0x4e8   :  { %6109 = vst [vmem:[#allocation39_spill] sm:$0xff] %v5698_v19 }
 0x4eb   :  { %v5702_v5 = vpop.permute.xlu1 %2618 }
 0x4ec   :  { %6110 = vst [vmem:[#allocation40_spill] sm:$0xff] %v5702_v5 }
 0x4ef   :  { %v5714_v13 = vpop.permute.xlu1 %2608 }
 0x4f0   :  { %6111 = vst [vmem:[#allocation41_spill] sm:$0xff] %v5714_v13 }
 0x505   :  { %v5689_v24 = vpop.f32.mrb[56].mxu1 }
 0x506   :  { %4409 = vrcp.f32 %v5689_v24  ;;  %v5692_v23 = vpop.f32.mrb[57].mxu1 }
 0x507   :  { %v5694_v48 = vpop.f32.mrb[58].mxu1  ;;  %4411 = vrcp.f32 %v5692_v23 }
 0x508   :  { %v5696_v27 = vpop.f32.mrb[59].mxu1  ;;  %4413 = vrcp.f32 %v5694_v48 }
 0x50f   :  { %v5704_v53 = vpop.f32.mrb[60].mxu1 }
 0x510   :  { %v4410_v2 = vpop.eup %4409  ;;  %4415 = vrcp.f32 %v5704_v53  ;;  %v5707_v11 = vpop.f32.mrb[61].mxu1 }
 0x511   :  { %v5709_v40 = vpop.f32.mrb[62].mxu1  ;;  %2798 = vperm.xlu1 %4184, %v4410_v2   ;;  %4417 = vrcp.f32 %v5696_v27  ;;  %v4412_v19 = vpop.eup %4411 }
 0x512   :  { %v5712_v60 = vpop.f32.mrb[63].mxu1  ;;  %4419 = vrcp.f32 %v5707_v11  ;;  %v4414_v17 = vpop.eup %4413 }
 0x513   :  { %4421 = vrcp.f32 %v5709_v40 }
 0x515   :  { %2788 = vperm.xlu1 %4184, %v4412_v19  }
 0x519   :  { %2803 = vperm.xlu1 %4184, %v4414_v17   ;;  %v2639_v25 = vpop.permute.xlu1 %2638 }
 0x51a   :  { %v4416_v56 = vpop.eup %4415  ;;  %v5718_v3 = vpop.f32.mrb[72].mxu0 }
 0x51b   :  { %4423 = vrcp.f32 %v5718_v3  ;;  %2818 = vperm.xlu0 %4183, %v4416_v56   ;;  %v5721_v2 = vpop.f32.mrb[73].mxu0  ;;  %v4418_v7 = vpop.eup %4417 }
 0x51c   :  { %v5723_v42 = vpop.f32.mrb[74].mxu0  ;;  %4425 = vrcp.f32 %v5712_v60  ;;  %v4420_v17 = vpop.eup %4419 }
 0x51d   :  { %v5725_v13 = vpop.f32.mrb[75].mxu0  ;;  %2793 = vperm.xlu1 %4184, %v4418_v7   ;;  %v2629_v19 = vpop.permute.xlu1 %2628  ;;  %4427 = vrcp.f32 %v5723_v42 }
 0x51e   :  { %4429 = vrcp.f32 %v5721_v2  ;;  %v4422_v6 = vpop.eup %4421 }
 0x51f   :  { %4431 = vrcp.f32 %v5725_v13 }
 0x521   :  { %2808 = vperm.xlu1 %4184, %v4420_v17   ;;  %v2644_v8 = vpop.permute.xlu1 %2643 }
 0x522   :  { %v5730_v61 = vpop.f32.mrb[76].mxu0 }
 0x523   :  { %6112 = vst [vmem:[#allocation42_spill] sm:$0xff] %v5730_v61  ;;  %v5733_v56 = vpop.f32.mrb[77].mxu0  ;;  %4433 = vrcp.f32 %v5730_v61 }
 0x524   :  { %6113 = vst [vmem:[#allocation43_spill] sm:$0xff] %v5733_v56  ;;  %v5735_v0 = vpop.f32.mrb[78].mxu0  ;;  %4435 = vrcp.f32 %v5733_v56 }
 0x525   :  { %6114 = vst [vmem:[#allocation44_spill] sm:$0xff] %v5735_v0  ;;  %v4424_v7 = vpop.eup %4423  ;;  %v5737_v5 = vpop.f32.mrb[79].mxu0  ;;  %2823 = vperm.xlu1 %4184, %v4422_v6   ;;  %v2884_v6 = vmul.f32 %v5567_v62, %v2639_v25  ;;  %4437 = vrcp.f32 %v5735_v0  ;;  %v2885_v62 = vmul.f32 %v5572_v50, %v2644_v8 }
 0x526   :  { %v2634_v57 = vpop.permute.xlu1 %2633  ;;  %2838 = vperm.xlu0 %4183, %v4424_v7   ;;  %v4426_v17 = vpop.eup %4425  ;;  %4439 = vrcp.f32 %v5737_v5 }
 0x527   :  { %v4428_v31 = vpop.eup %4427 }
 0x528   :  { %v4430_v22 = vpop.eup %4429 }
 0x529   :  { %2813 = vperm.xlu1 %4184, %v4426_v17   ;;  %v4432_v10 = vpop.eup %4431 }
 0x52a   :  { %v2659_v43 = vpop.permute.xlu1 %2658  ;;  %2843 = vperm.xlu0 %4183, %v4428_v31   ;;  %v2882_v31 = vmul.f32 %v2629_v19, %v5570_v21 }
 0x52c   :  { %v2679_v37 = vpop.permute.xlu0 %2678 }
 0x52d   :  { %2828 = vperm.xlu1 %4184, %v4430_v22   ;;  %v4434_v61 = vpop.eup %4433 }
 0x52e   :  { %v2649_v35 = vpop.permute.xlu1 %2648  ;;  %2833 = vperm.xlu0 %4183, %v4432_v10   ;;  %v4436_v56 = vpop.eup %4435 }
 0x52f   :  { %v4438_v25 = vpop.eup %4437 }
 0x530   :  { %v2684_v7 = vpop.permute.xlu0 %2683  ;;  %v4440_v21 = vpop.eup %4439 }
 0x531   :  { %2950 = vrot.lane.b32.xlu1 %v2884_v6, %s4562_s28 }
 0x532   :  { %v2664_v47 = vpop.permute.xlu1 %2663  ;;  %2858 = vperm.xlu0 %4183, %v4434_v61   ;;  %v2883_v61 = vmul.f32 %v2634_v57, %v5574_v30  ;;  %v2892_v57 = vmul.f32 %v5588_v59, %v2679_v37 }
 0x534   :  { %v2674_v17 = vpop.permute.xlu0 %2673 }
 0x535   :  { %2946 = vrot.lane.b32.xlu1 %v2882_v31, %s4562_s28  ;;  %v2888_v31 = vmul.f32 %v5578_v34, %v2659_v43  ;;  %v2893_v43 = vmul.f32 %v5594_v36, %v2684_v7 }
 0x536   :  { %v2654_v22 = vpop.permute.xlu1 %2653  ;;  %2848 = vperm.xlu0 %4183, %v4436_v56   ;;  %v2889_v56 = vmul.f32 %v5583_v20, %v2664_v47 }
 0x538   :  { %v2699_v10 = vpop.permute.xlu0 %2698 }
 0x539   :  { %2952 = vrot.lane.b32.xlu1 %v2885_v62, %s4562_s28  ;;  %v2886_v62 = vmul.f32 %v2649_v35, %v5581_v52  ;;  %v2891_v35 = vmul.f32 %v2674_v17, %v5596_v4  ;;  %v2896_v36 = vmul.f32 %v5602_v29, %v2699_v10 }
 0x53a   :  { %v2669_v0 = vpop.permute.xlu1 %2668  ;;  %2863 = vperm.xlu0 %4183, %v4438_v25   ;;  %v2887_v25 = vmul.f32 %v2654_v22, %v5585_v12 }
 0x53b   :  { %v2890_v47 = vmul.f32 %v2669_v0, %v5591_v55 }
 0x53c   :  { %v2689_v6 = vpop.permute.xlu0 %2688 }
 0x53d   :  { %2948 = vrot.lane.b32.xlu1 %v2883_v61, %s4562_s28  ;;  %v2894_v4 = vmul.f32 %v2689_v6, %v5604_v44 }
 0x53e   :  { %v2719_v19 = vpop.permute.xlu1 %2718  ;;  %2853 = vperm.xlu0 %4183, %v4440_v21  }
 0x53f   :  { %v2900_v12 = vmul.f32 %v5611_v33, %v2719_v19 }
 0x540   :  { %v2704_v8 = vpop.permute.xlu0 %2703 }
 0x541   :  { %2958 = vrot.lane.b32.xlu1 %v2888_v31, %s4562_s28  ;;  %v2897_v22 = vmul.f32 %v5606_v51, %v2704_v8  ;;  %v3175_v8 = vld [vmem:[#allocation7 + $0x18] sm:$0xff] }
 0x542   :  { %v2709_v50 = vpop.permute.xlu1 %2708  ;;  %2960 = vrot.lane.b32.xlu0 %v2889_v56, %s4562_s28  ;;  %v3173_v56 = vld [vmem:[#allocation7 + $0x8] sm:$0xff] }
 0x543   :  { %v2898_v55 = vmul.f32 %v2709_v50, %v5614_v45 }
 0x544   :  { %v2694_v34 = vpop.permute.xlu0 %2693 }
 0x545   :  { %2954 = vrot.lane.b32.xlu1 %v2886_v62, %s4562_s28  ;;  %v2895_v6 = vmul.f32 %v2694_v34, %v5609_v32 }
 0x546   :  { %v2724_v30 = vpop.permute.xlu1 %2723  ;;  %2966 = vrot.lane.b32.xlu0 %v2892_v57, %s4562_s28 }
 0x547   :  { %v2901_v29 = vmul.f32 %v5616_v16, %v2724_v30 }
 0x549   :  { %2956 = vrot.lane.b32.xlu1 %v2887_v25, %s4562_s28 }
 0x54a   :  { %v2714_v20 = vpop.permute.xlu1 %2713  ;;  %2968 = vrot.lane.b32.xlu0 %v2893_v43, %s4562_s28 }
 0x54b   :  { %v2899_v45 = vmul.f32 %v2714_v20, %v5618_v58 }
 0x54c   :  { %v2759_v52 = vpop.permute.xlu0 %2758 }
 0x54d   :  { %2962 = vrot.lane.b32.xlu1 %v2890_v47, %s4562_s28  ;;  %v2908_v58 = vmul.f32 %v5637_v49, %v2759_v52  ;;  %v3172_v49 = vld [vmem:[#allocation7] sm:$0xff] }
 0x54e   :  { %v2739_v59 = vpop.permute.xlu1 %2738  ;;  %2964 = vrot.lane.b32.xlu0 %v2891_v35, %s4562_s28  ;;  %v4004_v50 = vpack.c.bf16 %v3173_v56, %v3172_v49  ;;  %v6126_v56 = vld [vmem:[#allocation44_spill] sm:$0xff] }
 0x54f   :  { %v2904_v51 = vmul.f32 %v5625_v46, %v2739_v59 }
 0x550   :  { %v2764_v37 = vpop.permute.xlu0 %2763  ;;  %4005 = vmatprep.subr.bf16.mxu0 %v4004_v50  ;;  %4012 = vmatprep.subr.bf16.mxu1 %v4004_v50 }
 0x551   :  { %3014 = vrot.lane.b32.xlu1 %v2900_v12, %s4571_s16  ;;  %v2909_v46 = vmul.f32 %v5645_v54, %v2764_v37  ;;  %4007 = vmatpush3.bf16.msra.mxu0 %v4004_v50  ;;  %v3174_v54 = vld [vmem:[#allocation7 + $0x10] sm:$0xff] }
 0x552   :  { %v2729_v7 = vpop.permute.xlu1 %2728  ;;  %2974 = vrot.lane.b32.xlu0 %v2896_v36, %s4562_s28  ;;  %4014 = vmatpush3.bf16.msra.mxu1 %v4004_v50 }
 0x553   :  { %v5774_v0 = vmul.f32 %v2729_v7, %v5628_v39 }
 0x554   :  { %v2754_v17 = vpop.permute.xlu0 %2753 }
 0x555   :  { %3010 = vrot.lane.b32.xlu1 %v2898_v55, %s4571_s16 }
 0x556   :  { %v2744_v33 = vpop.permute.xlu1 %2743  ;;  %2970 = vrot.lane.b32.xlu0 %v2894_v4, %s4562_s28 }
 0x557   :  { %v2905_v16 = vmul.f32 %v5630_v18, %v2744_v33  ;;  %v2907_v18 = vmul.f32 %v2754_v17, %v5647_v15  ;;  %v4008_v15 = vpack.c.bf16 %v3175_v8, %v3174_v54 }
 0x558   :  { %v2779_v10 = vpop.permute.xlu0 %2778 }
 0x559   :  { %3016 = vrot.lane.b32.xlu1 %v2901_v29, %s4571_s16  ;;  %v5784_v39 = vmul.f32 %v5656_v14, %v2779_v10  ;;  %4009 = vmatprep.subr.bf16.mxu0 %v4008_v15  ;;  %v6116_v29 = vld [vmem:[#allocation42_spill] sm:$0xff] }
 0x55a   :  { %v2734_v61 = vpop.permute.xlu1 %2733  ;;  %2976 = vrot.lane.b32.xlu0 %v2897_v22, %s4562_s28  ;;  %4013 = vmatprep.subr.bf16.mxu1 %v4008_v15 }
 0x55b   :  { %v5788_v44 = vmul.f32 %v2734_v61, %v5632_v28  ;;  %4011 = vmatpush3.bf16.msra.mxu0 %v4008_v15  ;;  %4015 = vmatpush3.bf16.msra.mxu1 %v4008_v15  ;;  %v6117_v61 = vld [vmem:[#allocation43_spill] sm:$0xff] }
 0x55c   :  { %v2769_v21 = vpop.permute.xlu0 %2768 }
 0x55d   :  { %3012 = vrot.lane.b32.xlu1 %v2899_v45, %s4571_s16  ;;  %v6119_v45 = vld [vmem:[#allocation18_spill] sm:$0xff] }
 0x55e   :  { %2972 = vrot.lane.b32.xlu0 %v2895_v6, %s4562_s28  ;;  %v2749_v14 = vpop.permute.xlu1 %2748 }
 0x55f   :  { %v2906_v32 = vmul.f32 %v2749_v14, %v5642_v41 }
 0x560   :  { %v2784_v19 = vpop.permute.xlu0 %2783 }
 0x561   :  { %3022 = vrot.lane.b32.xlu1 %v2904_v51, %s4571_s16  ;;  %v5798_v28 = vmul.f32 %v5661_v9, %v2784_v19  ;;  %v2910_v9 = vmul.f32 %v2769_v21, %v5659_v38  ;;  %v6120_v21 = vld [vmem:[#allocation17_spill] sm:$0xff]  ;;  %v6121_v51 = vld [vmem:[#allocation27_spill] sm:$0xff] }
 0x562   :  { %3024 = vrot.lane.b32.xlu0 %v2905_v16, %s4571_s16 }
 0x564   :  { %v2774_v31 = vpop.permute.xlu0 %2773 }
 0x565   :  { %3026 = vrot.lane.b32.xlu1 %v2906_v32, %s4571_s16  ;;  %v2911_v41 = vmul.f32 %v2774_v31, %v5663_v63  ;;  %v6125_v31 = vld [vmem:[#allocation32_spill] sm:$0xff] }
 0x566   :  { %3030 = vrot.lane.b32.xlu0 %v2908_v58, %s4571_s16  ;;  %v6122_v58 = vld [vmem:[#allocation21_spill] sm:$0xff] }
 0x56a   :  { %3032 = vrot.lane.b32.xlu0 %v2909_v46, %s4571_s16  ;;  %v6123_v46 = vld [vmem:[#allocation38_spill] sm:$0xff] }
 0x56e   :  { %3028 = vrot.lane.b32.xlu0 %v2907_v18, %s4571_s16  ;;  %v2871_v18 = vmul.f32 %v6123_v46, %v6122_v58 }
 0x572   :  { %3034 = vrot.lane.b32.xlu0 %v2910_v9, %s4571_s16  ;;  %v6124_v9 = vld [vmem:[#allocation33_spill] sm:$0xff] }
 0x576   :  { %3036 = vrot.lane.b32.xlu0 %v2911_v41, %s4571_s16  ;;  %v2877_v41 = vmul.f32 %v6125_v31, %v6124_v9 }
 0x590   :  { %v2799_v62 = vpop.permute.xlu1 %2798 }
 0x591   :  { %v2916_v38 = vmul.f32 %v5689_v24, %v2799_v62  ;;  %v6127_v62 = vld [vmem:[#allocation40_spill] sm:$0xff] }
 0x593   :  { %3078 = vrot.lane.b32.xlu1 %v2916_v38, %s4572_s17  ;;  %v6128_v38 = vld [vmem:[#allocation29_spill] sm:$0xff] }
 0x594   :  { %v2789_v63 = vpop.permute.xlu1 %2788 }
 0x595   :  { %v2914_v57 = vmul.f32 %v2789_v63, %v5692_v23  ;;  %v2880_v63 = vmul.f32 %v6128_v38, %v6127_v62 }
 0x597   :  { %3074 = vrot.lane.b32.xlu1 %v2914_v57, %s4572_s17 }
 0x598   :  { %v2804_v30 = vpop.permute.xlu1 %2803 }
 0x599   :  { %v2917_v25 = vmul.f32 %v5694_v48, %v2804_v30 }
 0x59a   :  { %v2819_v34 = vpop.permute.xlu0 %2818 }
 0x59b   :  { %3080 = vrot.lane.b32.xlu1 %v2917_v25, %s4572_s17  ;;  %v2920_v47 = vmul.f32 %v5704_v53, %v2819_v34  ;;  %v2868_v53 = vmul.f32 %v5501_v1, %v5634_v26 }
 0x59c   :  { %v2794_v43 = vpop.permute.xlu1 %2793 }
 0x59d   :  { %v2915_v24 = vmul.f32 %v2794_v43, %v5696_v27 }
 0x59f   :  { %3076 = vrot.lane.b32.xlu1 %v2915_v24, %s4572_s17  ;;  %v6129_v24 = vld [vmem:[#allocation23_spill] sm:$0xff] }
 0x5a0   :  { %v2809_v20 = vpop.permute.xlu1 %2808 }
 0x5a1   :  { %v2918_v4 = vmul.f32 %v2809_v20, %v5707_v11 }
 0x5a3   :  { %3086 = vrot.lane.b32.xlu1 %v2920_v47, %s4572_s17 }
 0x5a4   :  { %v2824_v35 = vpop.permute.xlu1 %2823 }
 0x5a5   :  { %v2921_v23 = vmul.f32 %v5709_v40, %v2824_v35  ;;  %v2839_v52 = vpop.permute.xlu0 %2838 }
 0x5a6   :  { %v2924_v59 = vmul.f32 %v5718_v3, %v2839_v52 }
 0x5a7   :  { %3088 = vrot.lane.b32.xlu0 %v2921_v23, %s4572_s17 }
 0x5a8   :  { %v2814_v48 = vpop.permute.xlu1 %2813 }
 0x5a9   :  { %v2844_v12 = vpop.permute.xlu0 %2843 }
 0x5aa   :  { %v2925_v55 = vmul.f32 %v5723_v42, %v2844_v12  ;;  %v2919_v42 = vmul.f32 %v2814_v48, %v5712_v60  ;;  %v2876_v60 = vmul.f32 %v6121_v51, %v6120_v21  ;;  %v6135_v21 = vld [vmem:[#allocation22_spill] sm:$0xff] }
 0x5ab   :  { %3094 = vrot.lane.b32.xlu0 %v2924_v59, %s4572_s17 }
 0x5ac   :  { %v2829_v27 = vpop.permute.xlu1 %2828 }
 0x5ad   :  { %v2922_v36 = vmul.f32 %v2829_v27, %v5721_v2  ;;  %v2834_v37 = vpop.permute.xlu0 %2833 }
 0x5ae   :  { %v2923_v17 = vmul.f32 %v2834_v37, %v5725_v13  ;;  %v6118_v13 = vld [vmem:[#allocation26_spill] sm:$0xff] }
 0x5af   :  { %3090 = vrot.lane.b32.xlu1 %v2922_v36, %s4572_s17  ;;  %3038 = vrot.lane.b32.xlu0 %v5784_v39, %s4571_s16  ;;  %v2870_v6 = vmul.f32 %v6119_v45, %v6118_v13 }
 0x5b0   :  { %v2951_v40 = vpop.permute.xlu1 %2950 }
 0x5b1   :  { %v5834_v7 = vsel %vm491_vm1, %v2868_v53, %v2951_v40  ;;  %v2859_v3 = vpop.permute.xlu0 %2858  ;;  %v6130_v40 = vld [vmem:[#allocation15_spill] sm:$0xff] }
 0x5b2   :  { %v2928_v22 = vmul.f32 %v6116_v29, %v2859_v3  ;;  %v6131_v3 = vld [vmem:[#allocation34_spill] sm:$0xff] }
 0x5b3   :  { %3018 = vrot.lane.b32.xlu1 %v5774_v0, %s4571_s16  ;;  %3040 = vrot.lane.b32.xlu0 %v5798_v28, %s4571_s16 }
 0x5b4   :  { %v2947_v2 = vpop.permute.xlu1 %2946 }
 0x5b5   :  { %v2849_v1 = vpop.permute.xlu0 %2848 }
 0x5b6   :  { %v2926_v11 = vmul.f32 %v2849_v1, %v6117_v61 }
 0x5b7   :  { %3020 = vrot.lane.b32.xlu1 %v5788_v44, %s4571_s16  ;;  %3096 = vrot.lane.b32.xlu0 %v2925_v55, %s4572_s17  ;;  %v2866_v55 = vmul.f32 %v6131_v3, %v6130_v40 }
 0x5b8   :  { %v5844_v26 = vpop.permute.xlu1 %2952 }
 0x5b9   :  { %v2864_v33 = vpop.permute.xlu0 %2863  ;;  %v3122_v1 = vsel %vm491_vm1, %v2866_v55, %v2947_v2  ;;  %v6142_v55 = vld [vmem:[#allocation20_spill] sm:$0xff] }
 0x5ba   :  { %v2929_v50 = vmul.f32 %v6126_v56, %v2864_v33  ;;  %v6139_v56 = vld [vmem:[#allocation25_spill] sm:$0xff] }
 0x5bb   :  { %3082 = vrot.lane.b32.xlu1 %v2918_v4, %s4572_s17  ;;  %3092 = vrot.lane.b32.xlu0 %v2923_v17, %s4572_s17 }
 0x5bc   :  { %v2949_v0 = vpop.permute.xlu1 %2948 }
 0x5bd   :  { %v2854_v10 = vpop.permute.xlu0 %2853 }
 0x5be   :  { %v2927_v14 = vmul.f32 %v2854_v10, %v5737_v5  ;;  %v6133_v10 = vld [vmem:[#allocation36_spill] sm:$0xff] }
 0x5bf   :  { %3084 = vrot.lane.b32.xlu1 %v2919_v42, %s4572_s17  ;;  %3102 = vrot.lane.b32.xlu0 %v2928_v22, %s4572_s17  ;;  %v6132_v22 = vld [vmem:[#allocation19_spill] sm:$0xff] }
 0x5c0   :  { %v2959_v39 = vpop.permute.xlu1 %2958  ;;  %v2867_v61 = vmul.f32 %v6133_v10, %v6132_v22 }
 0x5c1   :  { %v5855_v44 = vpop.permute.xlu0 %2960 }
 0x5c2   :  { %v3123_v13 = vsel %vm491_vm1, %v2867_v61, %v2949_v0  ;;  %v6144_v61 = vld [vmem:[#allocation41_spill] sm:$0xff] }
 0x5c3   :  { %3098 = vrot.lane.b32.xlu0 %v2926_v11, %s4572_s17 }
 0x5c4   :  { %v2955_v16 = vpop.permute.xlu1 %2954 }
 0x5c5   :  { %v5864_v19 = vsel %vm491_vm1, %v2870_v6, %v2955_v16  ;;  %v2967_v28 = vpop.permute.xlu0 %2966  ;;  %v6134_v6 = vld [vmem:[#allocation35_spill] sm:$0xff]  ;;  %v6137_v16 = vld [vmem:[#allocation24_spill] sm:$0xff] }
 0x5c6   :  { %v5867_v32 = vsel %vm491_vm1, %v2876_v60, %v2967_v28  ;;  %v2869_v51 = vmul.f32 %v6135_v21, %v6134_v6  ;;  %v6136_v60 = vld [vmem:[#allocation37_spill] sm:$0xff] }
 0x5c7   :  { %3100 = vrot.lane.b32.xlu0 %v2927_v14, %s4572_s17  ;;  %v2872_v14 = vmul.f32 %v6137_v16, %v6136_v60  ;;  %v6146_v21 = vld [vmem:[#allocation45_spill] sm:$0xff] }
 0x5c8   :  { %v2957_v49 = vpop.permute.xlu1 %2956  ;;  %v3125_v0 = vsel %vm491_vm1, %v2869_v51, %v5844_v26 }
 0x5c9   :  { %v5876_v5 = vsel %vm491_vm1, %v2871_v18, %v2957_v49  ;;  %v2969_v54 = vpop.permute.xlu0 %2968  ;;  %v3128_v18 = vsel %vm491_vm1, %v2872_v14, %v2959_v39 }
 0x5ca   :  { %v5879_v8 = vsel %vm491_vm1, %v2877_v41, %v2969_v54 }
 0x5cb   :  { %3104 = vrot.lane.b32.xlu0 %v2929_v50, %s4572_s17 }
 0x5cc   :  { %v2963_v20 = vpop.permute.xlu1 %2962 }
 0x5cd   :  { %v5882_v15 = vpop.permute.xlu0 %2964 }
 0x5d0   :  { %v3015_v47 = vpop.permute.xlu1 %3014 }
 0x5d1   :  { %v2975_v57 = vpop.permute.xlu0 %2974  ;;  %v3141_v28 = vsel %vm3138_vm3, %v5834_v7, %v3015_v47  ;;  %v6138_v7 = vld [vmem:[#allocation28_spill] sm:$0xff] }
 0x5d2   :  { %v5887_v30 = vsel %vm491_vm1, %v2880_v63, %v2975_v57  ;;  %v2873_v50 = vmul.f32 %v6139_v56, %v6138_v7 }
 0x5d4   :  { %v3011_v35 = vpop.permute.xlu1 %3010  ;;  %v3129_v26 = vsel %vm491_vm1, %v2873_v50, %v5855_v44 }
 0x5d5   :  { %v5889_v25 = vpop.permute.xlu0 %2970  ;;  %v3139_v4 = vsel %vm3138_vm3, %v3122_v1, %v3011_v35  ;;  %v3131_v1 = vsel %vm491_vm1, %v6142_v55, %v5882_v15 }
 0x5d8   :  { %v3017_v23 = vpop.permute.xlu1 %3016 }
 0x5d9   :  { %v2977_v43 = vpop.permute.xlu0 %2976  ;;  %v3142_v9 = vsel %vm3138_vm3, %v3125_v0, %v3017_v23 }
 0x5da   :  { %v5893_v34 = vsel %vm491_vm1, %v6129_v24, %v2977_v43  ;;  %v6140_v43 = vld [vmem:[#allocation16_spill] sm:$0xff]  ;;  %v6141_v24 = vld [vmem:[#allocation39_spill] sm:$0xff] }
 0x5db   :  { %v2874_v47 = vmul.f32 %v6141_v24, %v6140_v43 }
 0x5dc   :  { %v3013_v48 = vpop.permute.xlu1 %3012 }
 0x5dd   :  { %v5895_v52 = vpop.permute.xlu0 %2972  ;;  %v3140_v45 = vsel %vm3138_vm3, %v3123_v13, %v3013_v48  ;;  %v3130_v35 = vsel %vm491_vm1, %v2874_v47, %v2963_v20 }
 0x5e0   :  { %v3023_v12 = vpop.permute.xlu1 %3022 }
 0x5e1   :  { %v3025_v59 = vpop.permute.xlu0 %3024  ;;  %v3145_v31 = vsel %vm3138_vm3, %v3128_v18, %v3023_v12  ;;  %v3491_v18 = vld [vmem:[#allocation8] ss:$0 sm:$0xff] }
 0x5e2   :  { %v3146_v39 = vsel %vm3138_vm3, %v3129_v26, %v3025_v59 }
 0x5e4   :  { %v3027_v36 = vpop.permute.xlu1 %3026 }
 0x5e5   :  { %v3031_v27 = vpop.permute.xlu0 %3030  ;;  %v3147_v23 = vsel %vm3138_vm3, %v3130_v35, %v3027_v36 }
 0x5e9   :  { %v5897_v37 = vpop.permute.xlu0 %3032 }
 0x5ed   :  { %v3029_v17 = vpop.permute.xlu0 %3028 }
 0x5f1   :  { %v3035_v11 = vpop.permute.xlu0 %3034 }
 0x5f5   :  { %v3037_v41 = vpop.permute.xlu0 %3036 }
 0x605   :  { %v3079_v53 = vpop.permute.xlu1 %3078 }
 0x606   :  { %v3158_v46 = vsel %vm3155_vm4, %v3141_v28, %v3079_v53 }
 0x609   :  { %v3075_v33 = vpop.permute.xlu1 %3074 }
 0x60a   :  { %v3156_v42 = vsel %vm3155_vm4, %v3139_v4, %v3075_v33  ;;  %v3148_v4 = vsel %vm3138_vm3, %v3131_v1, %v3029_v17  ;;  %v6143_v17 = vld [vmem:[#allocation31_spill] sm:$0xff] }
 0x60b   :  { %3972 = vmatprep.mubr.msk.f32.mxu0 %vm93_vm0, %v3156_v42  ;;  %v3149_v42 = vsel %vm3138_vm3, %v5867_v32, %v3031_v27  ;;  %v2878_v13 = vmul.f32 %v6144_v61, %v6143_v17 }
 0x60d   :  { %v3081_v29 = vpop.permute.xlu1 %3080  ;;  %v3134_v6 = vsel %vm491_vm1, %v2878_v13, %v5889_v25 }
 0x60e   :  { %v3159_v54 = vsel %vm3155_vm4, %v3142_v9, %v3081_v29 }
 0x611   :  { %v3077_v2 = vpop.permute.xlu1 %3076 }
 0x612   :  { %v3157_v58 = vsel %vm3155_vm4, %v3140_v45, %v3077_v2 }
 0x613   :  { %3973 = vmatmul.mubr.msk.f32.vlgmr.msra.gmra.mrb[80].mxu0 %vm93_vm0, %v3157_v58 }
 0x614   :  { %3975 = vmatprep.mubr.msk.f32.mxu0 %vm93_vm0, %v3158_v46 }
 0x615   :  { %v3087_v49 = vpop.permute.xlu1 %3086 }
 0x616   :  { %v3162_v62 = vsel %vm3155_vm4, %v3145_v31, %v3087_v49 }
 0x617   :  { %3976 = vmatmul.mubr.msk.f32.gmra.mrb[82].mxu0 %vm93_vm0, %v3159_v54  ;;  %3981 = vmatprep.mubr.msk.f32.mxu1 %vm93_vm0, %v3162_v62 }
 0x619   :  { %v3089_v38 = vpop.permute.xlu0 %3088 }
 0x61a   :  { %v3163_v63 = vsel %vm3155_vm4, %v3146_v39, %v3089_v38 }
 0x61b   :  { %3982 = vmatmul.mubr.msk.f32.vlgmr.msra.gmra.mrb[64].mxu1 %vm93_vm0, %v3163_v63 }
 0x61d   :  { %v3095_v57 = vpop.permute.xlu0 %3094 }
 0x61e   :  { %v3166_v10 = vsel %vm3155_vm4, %v3149_v42, %v3095_v57 }
 0x621   :  { %v3091_v48 = vpop.permute.xlu1 %3090  ;;  %v3039_v12 = vpop.permute.xlu0 %3038 }
 0x622   :  { %v3164_v53 = vsel %vm3155_vm4, %v3147_v23, %v3091_v48  ;;  %v3153_v58 = vsel %vm3138_vm3, %v5887_v30, %v3039_v12 }
 0x623   :  { %3984 = vmatprep.mubr.msk.f32.mxu1 %vm93_vm0, %v3164_v53 }
 0x625   :  { %v3019_v44 = vpop.permute.xlu1 %3018  ;;  %v3041_v59 = vpop.permute.xlu0 %3040 }
 0x626   :  { %v3143_v20 = vsel %vm3138_vm3, %v5864_v19, %v3019_v44  ;;  %v3150_v19 = vsel %vm3138_vm3, %v5879_v8, %v5897_v37  ;;  %v3151_v8 = vsel %vm3138_vm3, %v3134_v6, %v3035_v11  ;;  %v3154_v46 = vsel %vm3138_vm3, %v5893_v34, %v3041_v59 }
 0x629   :  { %v3021_v40 = vpop.permute.xlu1 %3020  ;;  %v3097_v3 = vpop.permute.xlu0 %3096 }
 0x62a   :  { %v3144_v15 = vsel %vm3138_vm3, %v5876_v5, %v3021_v40  ;;  %v3167_v45 = vsel %vm3155_vm4, %v3150_v19, %v3097_v3  ;;  %v6145_v5 = vld [vmem:[#allocation30_spill] sm:$0xff] }
 0x62b   :  { %v2879_v51 = vmul.f32 %v6146_v21, %v6145_v5 }
 0x62d   :  { %v3083_v36 = vpop.permute.xlu1 %3082  ;;  %v3093_v33 = vpop.permute.xlu0 %3092  ;;  %v3135_v16 = vsel %vm491_vm1, %v2879_v51, %v5895_v52 }
 0x62e   :  { %v3160_v29 = vsel %vm3155_vm4, %v3143_v20, %v3083_v36  ;;  %v3165_v22 = vsel %vm3155_vm4, %v3148_v4, %v3093_v33  ;;  %v3152_v14 = vsel %vm3138_vm3, %v3135_v16, %v3037_v41 }
 0x62f   :  { %3978 = vmatprep.mubr.msk.f32.mxu0 %vm93_vm0, %v3160_v29  ;;  %3985 = vmatmul.mubr.msk.f32.gmra.mrb[66].mxu1 %vm93_vm0, %v3165_v22 }
 0x630   :  { %3987 = vmatprep.mubr.msk.f32.mxu1 %vm93_vm0, %v3166_v10 }
 0x631   :  { %v3085_v32 = vpop.permute.xlu1 %3084  ;;  %v3103_v27 = vpop.permute.xlu0 %3102 }
 0x632   :  { %v3161_v2 = vsel %vm3155_vm4, %v3144_v15, %v3085_v32  ;;  %v3170_v11 = vsel %vm3155_vm4, %v3153_v58, %v3103_v27 }
 0x633   :  { %3979 = vmatmul.mubr.msk.f32.gmra.mrb[84].mxu0 %vm93_vm0, %v3161_v2  ;;  %3988 = vmatmul.mubr.msk.f32.gmra.mrb[68].mxu1 %vm93_vm0, %v3167_v45 }
 0x635   :  { %v3099_v37 = vpop.permute.xlu0 %3098 }
 0x636   :  { %v3168_v60 = vsel %vm3155_vm4, %v3151_v8, %v3099_v37 }
 0x637   :  { %3990 = vmatprep.mubr.msk.f32.mxu1 %vm93_vm0, %v3168_v60 }
 0x639   :  { %v3101_v28 = vpop.permute.xlu0 %3100 }
 0x63a   :  { %v3169_v25 = vsel %vm3155_vm4, %v3152_v14, %v3101_v28 }
 0x63b   :  { %3991 = vmatmul.mubr.msk.f32.gmra.mrb[70].mxu1 %vm93_vm0, %v3169_v25 }
 0x63c   :  { %3993 = vmatprep.mubr.msk.f32.mxu1 %vm93_vm0, %v3170_v11 }
 0x63d   :  { %v3105_v0 = vpop.permute.xlu0 %3104 }
 0x63e   :  { %v3171_v52 = vsel %vm3155_vm4, %v3154_v46, %v3105_v0 }
 0x63f   :  { %3994 = vmatmul.mubr.msk.f32.gmra.mrb[72].mxu1 %vm93_vm0, %v3171_v52 }
 0x6e6   :  { %v3974_v9 = vpop.f32.mrb[80].mxu0 }
 0x6e7   :  { %v3303_v31 = vadd.f32 %v3974_v9, %v3491_v18  ;;  %v3297_v30 = vpop.f32.mrb[81].mxu0 }
 0x6e8   :  { %v3298_v41 = vadd.f32 %v3491_v18, %v3297_v30 }
 0x6e9   :  { %3377 = vst.msk [vmem:[#allocation10 + $0x8] sm:$0xff] %vm93_vm0, %v3303_v31 }
 0x6ea   :  { %3376 = vst.msk [vmem:[#allocation10] sm:$0xff] %vm93_vm0, %v3298_v41  ;;  %v3977_v49 = vpop.f32.mrb[82].mxu0 }
 0x6eb   :  { %v3313_v7 = vadd.f32 %v3977_v49, %v3491_v18  ;;  %v3307_v56 = vpop.f32.mrb[83].mxu0 }
 0x6ec   :  { %v3308_v50 = vadd.f32 %v3491_v18, %v3307_v56 }
 0x6ed   :  { %3379 = vst.msk [vmem:[#allocation10 + $0x18] sm:$0xff] %vm93_vm0, %v3313_v7 }
 0x6ee   :  { %3378 = vst.msk [vmem:[#allocation10 + $0x10] sm:$0xff] %vm93_vm0, %v3308_v50  ;;  %v3983_v34 = vpop.f32.mrb[64].mxu1 }
 0x6ef   :  { %v3333_v54 = vadd.f32 %v3983_v34, %v3491_v18  ;;  %v3327_v62 = vpop.f32.mrb[65].mxu1 }
 0x6f0   :  { %v3328_v26 = vadd.f32 %v3491_v18, %v3327_v62 }
 0x6f1   :  { %3383 = vst.msk [vmem:[#allocation10 + $0x38] sm:$0xff] %vm93_vm0, %v3333_v54 }
 0x6f2   :  { %3382 = vst.msk [vmem:[#allocation10 + $0x30] sm:$0xff] %vm93_vm0, %v3328_v26 }
 0x702   :  { %v3986_v39 = vpop.f32.mrb[66].mxu1 }
 0x703   :  { %v3343_v38 = vadd.f32 %v3986_v39, %v3491_v18  ;;  %v3337_v63 = vpop.f32.mrb[67].mxu1 }
 0x704   :  { %v3338_v57 = vadd.f32 %v3491_v18, %v3337_v63 }
 0x705   :  { %3385 = vst.msk [vmem:[#allocation10 + $0x48] sm:$0xff] %vm93_vm0, %v3343_v38 }
 0x706   :  { %3384 = vst.msk [vmem:[#allocation10 + $0x40] sm:$0xff] %vm93_vm0, %v3338_v57  ;;  %v3980_v43 = vpop.f32.mrb[84].mxu0  ;;  %v3989_v24 = vpop.f32.mrb[68].mxu1 }
 0x707   :  { %v3323_v47 = vadd.f32 %v3980_v43, %v3491_v18  ;;  %v3353_v35 = vadd.f32 %v3989_v24, %v3491_v18  ;;  %v3317_v23 = vpop.f32.mrb[85].mxu0  ;;  %v3347_v48 = vpop.f32.mrb[69].mxu1 }
 0x708   :  { %v3318_v12 = vadd.f32 %v3491_v18, %v3317_v23  ;;  %v3348_v53 = vadd.f32 %v3491_v18, %v3347_v48 }
 0x709   :  { %3381 = vst.msk [vmem:[#allocation10 + $0x28] sm:$0xff] %vm93_vm0, %v3323_v47  ;;  %3387 = vst.msk [vmem:[#allocation10 + $0x58] sm:$0xff] %vm93_vm0, %v3353_v35 }
 0x70a   :  { %3380 = vst.msk [vmem:[#allocation10 + $0x20] sm:$0xff] %vm93_vm0, %v3318_v12  ;;  %3386 = vst.msk [vmem:[#allocation10 + $0x50] sm:$0xff] %vm93_vm0, %v3348_v53 }
 0x70e   :  { %v3992_v44 = vpop.f32.mrb[70].mxu1 }
 0x70f   :  { %v3363_v59 = vadd.f32 %v3992_v44, %v3491_v18  ;;  %v3357_v40 = vpop.f32.mrb[71].mxu1 }
 0x710   :  { %v3358_v3 = vadd.f32 %v3491_v18, %v3357_v40 }
 0x711   :  { %3389 = vst.msk [vmem:[#allocation10 + $0x68] sm:$0xff] %vm93_vm0, %v3363_v59 }
 0x712   :  { %3388 = vst.msk [vmem:[#allocation10 + $0x60] sm:$0xff] %vm93_vm0, %v3358_v3  ;;  %v3995_v55 = vpop.f32.mrb[72].mxu1 }
 0x713   :  { %v3373_v1 = vadd.f32 %v3995_v55, %v3491_v18  ;;  %v3367_v4 = vpop.f32.mrb[73].mxu1 }
 0x714   :  { %v3368_v20 = vadd.f32 %v3491_v18, %v3367_v4 }
 0x715   :  { %3391 = vst.msk [vmem:[#allocation10 + $0x78] sm:$0xff] %vm93_vm0, %v3373_v1 }
 0x716   :  { %3390 = vst.msk [vmem:[#allocation10 + $0x70] sm:$0xff] %vm93_vm0, %v3368_v20 }
 0x717   :  { %4540 = shalt.err (!%p4537_p8)
}
 0x718   :  { %s4541_s24 = scalar_lea.hbm %s6021_s4, 2048 }
 0x719   :  { %p4542_p9 = scmp.ne.s32.totalorder %s6021_s4, %s4541_s24  ;;  %p4545_p10 = scmp.lt.u32.totalorder %s4541_s24, %s6021_s4 }
 0x71b   :  { %p4547_p11 = pnand %p4545_p10, %p4542_p9 }
 0x71d   :  { %4550 = shalt.err (!%p4547_p11)
}
 0x71e   :  { %3403 = dma.vmem_to_hbm [thread:$0]  %s3398_s20, 2048, %s6021_s4, [#allocation4], %s4561_s27, %s4561_s27, %s4562_s28  }
 0x71f   :  { %4557 = dma.done.wait [#allocation4], 2048  }
 0x720   :  { %4558 = vsyncadd [#allocation4], 4294965248 }
 0x721   :  { %3407 = vsyncpa [#allocation3], 1 }
 0x722   :  { %3408 = vsyncpa [#allocation6], 1 }
 0x723   :  { %3409 = vsyncpa [#allocation9], 1 }
 0x724   :  { %3410 = vsyncpa [#allocation4], 1 }

</bundles_post_ra>
